<compile_context>
chip_gen: v7x
topology: tpu7x:2x2x1
jax: 0.10.0
libtpu: 0.0.40
codegen_flags: <defaults>
</compile_context>

<pallas_src>
import functools

import jax
import jax.numpy as jnp
from jax.experimental import pallas as pl
from jax.experimental.pallas import tpu as pltpu


def _attentive_pool_kernel(x_ref, wbd_ref, wmlp_ref, shift_ref, o_ref, acts_ref,
                           *, chunk):
    # x_ref:     (1, K*Cin, TN) bf16   — point axis N in the lane dim.
    # wbd_ref:   (K*Cin, K*Cin) bf16   — block-diagonal fc weight.
    # wmlp_ref:  (Cout, Cin)    f32    — BN scale already folded in.
    # shift_ref: (Cout, 1)      f32    — conv bias + BN shift folded.
    # o_ref:     (1, Cout, TN)  f32
    # acts_ref:  (K*Cin, TN)    f32    — VMEM scratch staging the fc activations.
    cout, cin = wmlp_ref.shape
    kc, tn = acts_ref.shape
    k = kc // cin

    # --- fc (1x1 conv) for the whole tile: ONE block-diagonal MXU matmul ------
    acts_ref[...] = jnp.dot(wbd_ref[...], x_ref[0],
                            preferred_element_type=jnp.float32)

    wmlp = wmlp_ref[...]
    shift = shift_ref[...]

    # --- softmax over K + weighted sum + mlp, over 128-lane sub-chunks --------
    def body(c, carry):
        off = pl.multiple_of(c * chunk, chunk)
        a = acts_ref[:, pl.ds(off, chunk)].reshape(k, cin, chunk)       # f32
        xf = x_ref[0, :, pl.ds(off, chunk)].astype(jnp.float32)
        xf = xf.reshape(k, cin, chunk)

        m = jnp.max(a, axis=0)                                          # (cin, chunk)
        e = jnp.exp(a - m)                                              # (k, cin, chunk)
        s = jnp.sum(e, axis=0)                                          # (cin, chunk)
        agg = jnp.sum(xf * e, axis=0)                                   # (cin, chunk)
        # fold the softmax normalization: one EUP reciprocal per (cin, chunk) row.
        agg = agg * pl.reciprocal(s, approx=True)

        out = jnp.dot(wmlp, agg, preferred_element_type=jnp.float32) + shift
        out = jnp.where(out > 0, out, 0.2 * out)                        # LeakyReLU(0.2)
        o_ref[0, :, pl.ds(off, chunk)] = out.astype(o_ref.dtype)
        return carry

    jax.lax.fori_loop(0, tn // chunk, body, 0, unroll=True)


def attentive_pooling(features_nchw, w_fc, w_mlp, b_mlp, bn_gamma, bn_beta,
                      bn_mean, bn_var, bn_eps=1e-5, block_n=512, chunk=128,
                      compute_dtype=jnp.bfloat16):
    """features_nchw: (B, d_in, N, K) like PyTorch.  Returns (B, d_out, N, 1)."""
    B, Cin, N, K = features_nchw.shape
    Cout = w_mlp.shape[0]
    KC = K * Cin

    # --- layout glue: (B, Cin, N, K) -> (B, K*Cin, N) bf16, lane-dense in N ----
    x = jnp.transpose(features_nchw, (0, 3, 1, 2)).astype(compute_dtype)
    x = x.reshape(B, KC, N)

    # pad N up to a multiple of 128 (lane-dense unmasked stores, bounded tiles);
    # padded columns are sliced off the output.
    Np = ((N + 127) // 128) * 128
    if Np != N:
        x = jnp.pad(x, ((0, 0), (0, 0), (0, Np - N)))

    # N tile: largest multiple of 128 <= block_n that divides padded N.
    tn = max(128, min((block_n // 128) * 128, Np))
    while Np % tn:
        tn -= 128
    # in-kernel lane sub-chunk (128 is safe on all generations; 256 is a minor
    # MXU-fill tidy-up on v6e/v7x if vregs allow).
    ck = max(128, min((chunk // 128) * 128, tn))
    while tn % ck:
        ck -= 128
    grid = (B, Np // tn)

    # --- parameter folding -----------------------------------------------------
    # block-diagonal fc weight: one (K*Cin, K*Cin) matmul replaces K tiny ones.
    wbd = jnp.kron(jnp.eye(K, dtype=jnp.float32), w_fc).astype(compute_dtype)
    # fold conv bias + eval-mode BatchNorm into the mlp weight and an additive shift.
    bn_scale = bn_gamma / jnp.sqrt(bn_var + bn_eps)                      # (Cout,)
    eff_wmlp = (w_mlp * bn_scale[:, None]).astype(jnp.float32)           # (Cout, Cin)
    eff_shift = ((b_mlp - bn_mean) * bn_scale + bn_beta).reshape(Cout, 1).astype(jnp.float32)

    itemsize = jnp.dtype(compute_dtype).itemsize
    cost = pl.CostEstimate(
        flops=int(2 * B * Np * KC * KC + 6 * B * Np * KC + 2 * B * Np * Cin * Cout),
        transcendentals=int(B * Np * KC),
        bytes_accessed=int(B * KC * Np * itemsize + B * Cout * Np * 4
                           + KC * KC * itemsize + Cout * Cin * 4),
    )

    kernel = functools.partial(_attentive_pool_kernel, chunk=ck)
    out = pl.pallas_call(
        kernel,
        out_shape=jax.ShapeDtypeStruct((B, Cout, Np), jnp.float32),
        grid_spec=pltpu.PrefetchScalarGridSpec(
            num_scalar_prefetch=0,
            grid=grid,
            in_specs=[
                pl.BlockSpec((1, KC, tn), lambda b, n: (b, 0, n)),
                pl.BlockSpec((KC, KC), lambda b, n: (0, 0)),
                pl.BlockSpec((Cout, Cin), lambda b, n: (0, 0)),
                pl.BlockSpec((Cout, 1), lambda b, n: (0, 0)),
            ],
            out_specs=pl.BlockSpec((1, Cout, tn), lambda b, n: (b, 0, n)),
            scratch_shapes=[pltpu.VMEM((KC, tn), jnp.float32)],
        ),
        compiler_params=pltpu.CompilerParams(
            dimension_semantics=("parallel", "parallel"),
            vmem_limit_bytes=32 * 1024 * 1024,
        ),
        cost_estimate=cost,
    )(x, wbd, eff_wmlp, eff_shift)

    # back to the PyTorch output layout (B, d_out, N, 1) — no transpose needed.
    return out[:, :, :N][..., None]


def _reference(features, w_fc, w_mlp, b_mlp, gamma, beta, mean, var, eps=1e-5):
    # pure-JAX reference of the PyTorch forward (NCHW), for sanity checking.
    act = jnp.einsum('oc,bcnk->bonk', w_fc, features)
    scores = jax.nn.softmax(act, axis=3)
    agg = jnp.sum(features * scores, axis=3, keepdims=True)              # (B, Cin, N, 1)
    conv = jnp.einsum('oc,bcnk->bonk', w_mlp, agg) + b_mlp[None, :, None, None]
    bn = (conv - mean[None, :, None, None]) / jnp.sqrt(var[None, :, None, None] + eps)
    bn = bn * gamma[None, :, None, None] + beta[None, :, None, None]
    return jnp.where(bn > 0, bn, 0.2 * bn)


if __name__ == "__main__":
    def _check(B, d_in, d_out, N, K, seed=0):
        key = jax.random.PRNGKey(seed)
        k0, k1, k2, k3, k4, k5 = jax.random.split(key, 6)

        features = jax.random.normal(k0, (B, d_in, N, K), dtype=jnp.float32)
        w_fc = 0.2 * jax.random.normal(k1, (d_in, d_in), dtype=jnp.float32)
        w_mlp = 0.2 * jax.random.normal(k2, (d_out, d_in), dtype=jnp.float32)
        b_mlp = 0.1 * jax.random.normal(k3, (d_out,), dtype=jnp.float32)
        bn_gamma = 1.0 + 0.1 * jax.random.normal(k4, (d_out,), dtype=jnp.float32)
        bn_beta = 0.1 * jax.random.normal(k5, (d_out,), dtype=jnp.float32)
        bn_mean = jnp.zeros((d_out,), jnp.float32)    # BatchNorm2d running stats at init
        bn_var = jnp.ones((d_out,), jnp.float32)

        out = attentive_pooling(features, w_fc, w_mlp, b_mlp,
                                bn_gamma, bn_beta, bn_mean, bn_var)
        out = jax.block_until_ready(out)
        assert out.shape == (B, d_out, N, 1), out.shape

        # reference on identically bf16-rounded features / fc weight; tolerance
        # absorbs MXU default-precision + approx-reciprocal differences.
        f_r = features.astype(jnp.bfloat16).astype(jnp.float32)
        wfc_r = w_fc.astype(jnp.bfloat16).astype(jnp.float32)
        ref = _reference(f_r, wfc_r, w_mlp, b_mlp, bn_gamma, bn_beta, bn_mean, bn_var)
        err = float(jnp.max(jnp.abs(out - ref)))
        assert jnp.allclose(out, ref, atol=1e-2, rtol=1e-2), err

    _check(2, 8, 16, 512, 16)   # toy spec size: tn = N = 512, grid = (2, 1)
    _check(2, 8, 16, 192, 16)   # non-128-multiple N: exercises the padding path
    print("KERNEL_OK")
</pallas_src>

<mosaic_0001>
module attributes {stable_mosaic.version = 11 : i64} {
  func.func @_attentive_pool_kernel(%arg0: i32, %arg1: i32, %arg2: memref<1x128x512xbf16, #tpu.memory_space<vmem>>, %arg3: memref<128x128xbf16, #tpu.memory_space<vmem>>, %arg4: memref<16x8xf32, #tpu.memory_space<vmem>>, %arg5: memref<16x1xf32, #tpu.memory_space<vmem>>, %arg6: memref<1x16x512xf32, #tpu.memory_space<vmem>>, %arg7: memref<128x512xf32, #tpu.memory_space<vmem>>) attributes {dimension_semantics = [#tpu.dimension_semantics<parallel>, #tpu.dimension_semantics<parallel>], iteration_bounds = array<i64: 2, 1>, scalar_prefetch = 0 : i64, scratch_operands = 1 : i64, tpu.core_type = #tpu.core_type<tc>, window_params = [{transform_indices = @transform_0, window_bounds = array<i64: 1, 128, 512>}, {pipeline_mode = #tpu.pipeline_mode<synchronous>, transform_indices = @transform_1, window_bounds = array<i64: 128, 128>}, {pipeline_mode = #tpu.pipeline_mode<synchronous>, transform_indices = @transform_2, window_bounds = array<i64: 16, 8>}, {pipeline_mode = #tpu.pipeline_mode<synchronous>, transform_indices = @transform_3, window_bounds = array<i64: 16, 1>}, {transform_indices = @transform_4, window_bounds = array<i64: 1, 16, 512>}]} {
    %c0 = arith.constant 0 : index
    %c0_0 = arith.constant 0 : index
    %0 = vector.load %arg3[%c0, %c0_0] : memref<128x128xbf16, #tpu.memory_space<vmem>>, vector<128x128xbf16>
    %c0_1 = arith.constant 0 : index
    %c0_2 = arith.constant 0 : index
    %c0_3 = arith.constant 0 : index
    %1 = vector.load %arg2[%c0_1, %c0_2, %c0_3] : memref<1x128x512xbf16, #tpu.memory_space<vmem>>, vector<1x128x512xbf16>
    %2 = vector.shape_cast %1 : vector<1x128x512xbf16> to vector<128x512xbf16>
    %cst = arith.constant dense<0.000000e+00> : vector<128x512xf32>
    %3 = tpu.matmul %0, %2, %cst {dimension_numbers = #tpu.dot_dimension_numbers<[1], [0], [0], [1], [0, 0, 1, 1], [], []>} : vector<128x128xbf16>, vector<128x512xbf16>, vector<128x512xf32> -> vector<128x512xf32>
    %c0_4 = arith.constant 0 : index
    %c0_5 = arith.constant 0 : index
    %4 = vector.load %arg7[%c0_4, %c0_5] : memref<128x512xf32, #tpu.memory_space<vmem>>, vector<128x512xf32>
    tpu.vector_store %arg7[%c0_4, %c0_5], %3 {strides = array<i32>} : memref<128x512xf32, #tpu.memory_space<vmem>>, vector<128x512xf32>,
    %c0_6 = arith.constant 0 : index
    %c0_7 = arith.constant 0 : index
    %5 = vector.load %arg4[%c0_6, %c0_7] : memref<16x8xf32, #tpu.memory_space<vmem>>, vector<16x8xf32>
    %c0_8 = arith.constant 0 : index
    %c0_9 = arith.constant 0 : index
    %6 = vector.load %arg5[%c0_8, %c0_9] : memref<16x1xf32, #tpu.memory_space<vmem>>, vector<16x1xf32>
    %c0_i32 = arith.constant 0 : i32
    %c128_i32 = arith.constant 128 : i32
    %7 = arith.muli %c0_i32, %c128_i32 : i32
    %8 = tpu.assume_multiple %7, 128 : i32
    %c0_10 = arith.constant 0 : index
    %9 = arith.index_cast %8 : i32 to index
    %10 = vector.load %arg7[%c0_10, %9] : memref<128x512xf32, #tpu.memory_space<vmem>>, vector<128x128xf32>
    %11 = vector.shape_cast %10 : vector<128x128xf32> to vector<16x8x128xf32>
    %c0_11 = arith.constant 0 : index
    %c0_12 = arith.constant 0 : index
    %12 = arith.index_cast %8 : i32 to index
    %13 = vector.load %arg2[%c0_11, %c0_12, %12] : memref<1x128x512xbf16, #tpu.memory_space<vmem>>, vector<1x128x128xbf16>
    %14 = vector.shape_cast %13 : vector<1x128x128xbf16> to vector<128x128xbf16>
    %15 = arith.extf %14 : vector<128x128xbf16> to vector<128x128xf32>
    %16 = vector.shape_cast %15 : vector<128x128xf32> to vector<16x8x128xf32>
    %cst_13 = arith.constant dense<0xFF800000> : vector<8x128xf32>
    %17 = vector.multi_reduction <maximumf>, %11, %cst_13 [0] : vector<16x8x128xf32> to vector<8x128xf32>
    %18 = vector.shape_cast %17 : vector<8x128xf32> to vector<1x8x128xf32>
    %19 = vector.broadcast %18 : vector<1x8x128xf32> to vector<16x8x128xf32>
    %20 = arith.subf %11, %19 : vector<16x8x128xf32>
    %21 = math.exp %20 : vector<16x8x128xf32>
    %cst_14 = arith.constant dense<0.000000e+00> : vector<8x128xf32>
    %22 = vector.multi_reduction <add>, %21, %cst_14 [0] : vector<16x8x128xf32> to vector<8x128xf32>
    %23 = arith.mulf %16, %21 : vector<16x8x128xf32>
    %cst_15 = arith.constant dense<0.000000e+00> : vector<8x128xf32>
    %24 = vector.multi_reduction <add>, %23, %cst_15 [0] : vector<16x8x128xf32> to vector<8x128xf32>
    %25 = tpu.reciprocal %22 {approx = true} : vector<8x128xf32> -> vector<8x128xf32>
    %26 = arith.mulf %24, %25 : vector<8x128xf32>
    %cst_16 = arith.constant dense<0.000000e+00> : vector<16x128xf32>
    %27 = tpu.matmul %5, %26, %cst_16 {dimension_numbers = #tpu.dot_dimension_numbers<[1], [0], [0], [1], [0, 0, 1, 1], [], []>} : vector<16x8xf32>, vector<8x128xf32>, vector<16x128xf32> -> vector<16x128xf32>
    %28 = vector.broadcast %6 : vector<16x1xf32> to vector<16x128xf32>
    %29 = arith.addf %27, %28 : vector<16x128xf32>
    %cst_17 = arith.constant 0.000000e+00 : f32
    %30 = vector.broadcast %cst_17 : f32 to vector<16x128xf32>
    %31 = arith.cmpf ogt, %29, %30 : vector<16x128xf32>
    %cst_18 = arith.constant 2.000000e-01 : f32
    %32 = vector.broadcast %cst_18 : f32 to vector<16x128xf32>
    %33 = arith.mulf %32, %29 : vector<16x128xf32>
    %34 = arith.select %31, %29, %33 : vector<16x128xi1>, vector<16x128xf32>
    %c0_19 = arith.constant 0 : index
    %c0_20 = arith.constant 0 : index
    %35 = arith.index_cast %8 : i32 to index
    %36 = vector.load %arg6[%c0_19, %c0_20, %35] : memref<1x16x512xf32, #tpu.memory_space<vmem>>, vector<1x16x128xf32>
    %37 = vector.shape_cast %36 : vector<1x16x128xf32> to vector<16x128xf32>
    %38 = vector.shape_cast %34 : vector<16x128xf32> to vector<1x16x128xf32>
    tpu.vector_store %arg6[%c0_19, %c0_20, %35], %38 {strides = array<i32>} : memref<1x16x512xf32, #tpu.memory_space<vmem>>, vector<1x16x128xf32>,
    %c1_i32 = arith.constant 1 : i32
    %c128_i32_21 = arith.constant 128 : i32
    %39 = arith.muli %c1_i32, %c128_i32_21 : i32
    %40 = tpu.assume_multiple %39, 128 : i32
    %c0_22 = arith.constant 0 : index
    %41 = arith.index_cast %40 : i32 to index
    %42 = vector.load %arg7[%c0_22, %41] : memref<128x512xf32, #tpu.memory_space<vmem>>, vector<128x128xf32>
    %43 = vector.shape_cast %42 : vector<128x128xf32> to vector<16x8x128xf32>
    %c0_23 = arith.constant 0 : index
    %c0_24 = arith.constant 0 : index
    %44 = arith.index_cast %40 : i32 to index
    %45 = vector.load %arg2[%c0_23, %c0_24, %44] : memref<1x128x512xbf16, #tpu.memory_space<vmem>>, vector<1x128x128xbf16>
    %46 = vector.shape_cast %45 : vector<1x128x128xbf16> to vector<128x128xbf16>
    %47 = arith.extf %46 : vector<128x128xbf16> to vector<128x128xf32>
    %48 = vector.shape_cast %47 : vector<128x128xf32> to vector<16x8x128xf32>
    %cst_25 = arith.constant dense<0xFF800000> : vector<8x128xf32>
    %49 = vector.multi_reduction <maximumf>, %43, %cst_25 [0] : vector<16x8x128xf32> to vector<8x128xf32>
    %50 = vector.shape_cast %49 : vector<8x128xf32> to vector<1x8x128xf32>
    %51 = vector.broadcast %50 : vector<1x8x128xf32> to vector<16x8x128xf32>
    %52 = arith.subf %43, %51 : vector<16x8x128xf32>
    %53 = math.exp %52 : vector<16x8x128xf32>
    %cst_26 = arith.constant dense<0.000000e+00> : vector<8x128xf32>
    %54 = vector.multi_reduction <add>, %53, %cst_26 [0] : vector<16x8x128xf32> to vector<8x128xf32>
    %55 = arith.mulf %48, %53 : vector<16x8x128xf32>
    %cst_27 = arith.constant dense<0.000000e+00> : vector<8x128xf32>
    %56 = vector.multi_reduction <add>, %55, %cst_27 [0] : vector<16x8x128xf32> to vector<8x128xf32>
    %57 = tpu.reciprocal %54 {approx = true} : vector<8x128xf32> -> vector<8x128xf32>
    %58 = arith.mulf %56, %57 : vector<8x128xf32>
    %cst_28 = arith.constant dense<0.000000e+00> : vector<16x128xf32>
    %59 = tpu.matmul %5, %58, %cst_28 {dimension_numbers = #tpu.dot_dimension_numbers<[1], [0], [0], [1], [0, 0, 1, 1], [], []>} : vector<16x8xf32>, vector<8x128xf32>, vector<16x128xf32> -> vector<16x128xf32>
    %60 = vector.broadcast %6 : vector<16x1xf32> to vector<16x128xf32>
    %61 = arith.addf %59, %60 : vector<16x128xf32>
    %cst_29 = arith.constant 0.000000e+00 : f32
    %62 = vector.broadcast %cst_29 : f32 to vector<16x128xf32>
    %63 = arith.cmpf ogt, %61, %62 : vector<16x128xf32>
    %cst_30 = arith.constant 2.000000e-01 : f32
    %64 = vector.broadcast %cst_30 : f32 to vector<16x128xf32>
    %65 = arith.mulf %64, %61 : vector<16x128xf32>
    %66 = arith.select %63, %61, %65 : vector<16x128xi1>, vector<16x128xf32>
    %c0_31 = arith.constant 0 : index
    %c0_32 = arith.constant 0 : index
    %67 = arith.index_cast %40 : i32 to index
    %68 = vector.load %arg6[%c0_31, %c0_32, %67] : memref<1x16x512xf32, #tpu.memory_space<vmem>>, vector<1x16x128xf32>
    %69 = vector.shape_cast %68 : vector<1x16x128xf32> to vector<16x128xf32>
    %70 = vector.shape_cast %66 : vector<16x128xf32> to vector<1x16x128xf32>
    tpu.vector_store %arg6[%c0_31, %c0_32, %67], %70 {strides = array<i32>} : memref<1x16x512xf32, #tpu.memory_space<vmem>>, vector<1x16x128xf32>,
    %c2_i32 = arith.constant 2 : i32
    %c128_i32_33 = arith.constant 128 : i32
    %71 = arith.muli %c2_i32, %c128_i32_33 : i32
    %72 = tpu.assume_multiple %71, 128 : i32
    %c0_34 = arith.constant 0 : index
    %73 = arith.index_cast %72 : i32 to index
    %74 = vector.load %arg7[%c0_34, %73] : memref<128x512xf32, #tpu.memory_space<vmem>>, vector<128x128xf32>
    %75 = vector.shape_cast %74 : vector<128x128xf32> to vector<16x8x128xf32>
    %c0_35 = arith.constant 0 : index
    %c0_36 = arith.constant 0 : index
    %76 = arith.index_cast %72 : i32 to index
    %77 = vector.load %arg2[%c0_35, %c0_36, %76] : memref<1x128x512xbf16, #tpu.memory_space<vmem>>, vector<1x128x128xbf16>
    %78 = vector.shape_cast %77 : vector<1x128x128xbf16> to vector<128x128xbf16>
    %79 = arith.extf %78 : vector<128x128xbf16> to vector<128x128xf32>
    %80 = vector.shape_cast %79 : vector<128x128xf32> to vector<16x8x128xf32>
    %cst_37 = arith.constant dense<0xFF800000> : vector<8x128xf32>
    %81 = vector.multi_reduction <maximumf>, %75, %cst_37 [0] : vector<16x8x128xf32> to vector<8x128xf32>
    %82 = vector.shape_cast %81 : vector<8x128xf32> to vector<1x8x128xf32>
    %83 = vector.broadcast %82 : vector<1x8x128xf32> to vector<16x8x128xf32>
    %84 = arith.subf %75, %83 : vector<16x8x128xf32>
    %85 = math.exp %84 : vector<16x8x128xf32>
    %cst_38 = arith.constant dense<0.000000e+00> : vector<8x128xf32>
    %86 = vector.multi_reduction <add>, %85, %cst_38 [0] : vector<16x8x128xf32> to vector<8x128xf32>
    %87 = arith.mulf %80, %85 : vector<16x8x128xf32>
    %cst_39 = arith.constant dense<0.000000e+00> : vector<8x128xf32>
    %88 = vector.multi_reduction <add>, %87, %cst_39 [0] : vector<16x8x128xf32> to vector<8x128xf32>
    %89 = tpu.reciprocal %86 {approx = true} : vector<8x128xf32> -> vector<8x128xf32>
    %90 = arith.mulf %88, %89 : vector<8x128xf32>
    %cst_40 = arith.constant dense<0.000000e+00> : vector<16x128xf32>
    %91 = tpu.matmul %5, %90, %cst_40 {dimension_numbers = #tpu.dot_dimension_numbers<[1], [0], [0], [1], [0, 0, 1, 1], [], []>} : vector<16x8xf32>, vector<8x128xf32>, vector<16x128xf32> -> vector<16x128xf32>
    %92 = vector.broadcast %6 : vector<16x1xf32> to vector<16x128xf32>
    %93 = arith.addf %91, %92 : vector<16x128xf32>
    %cst_41 = arith.constant 0.000000e+00 : f32
    %94 = vector.broadcast %cst_41 : f32 to vector<16x128xf32>
    %95 = arith.cmpf ogt, %93, %94 : vector<16x128xf32>
    %cst_42 = arith.constant 2.000000e-01 : f32
    %96 = vector.broadcast %cst_42 : f32 to vector<16x128xf32>
    %97 = arith.mulf %96, %93 : vector<16x128xf32>
    %98 = arith.select %95, %93, %97 : vector<16x128xi1>, vector<16x128xf32>
    %c0_43 = arith.constant 0 : index
    %c0_44 = arith.constant 0 : index
    %99 = arith.index_cast %72 : i32 to index
    %100 = vector.load %arg6[%c0_43, %c0_44, %99] : memref<1x16x512xf32, #tpu.memory_space<vmem>>, vector<1x16x128xf32>
    %101 = vector.shape_cast %100 : vector<1x16x128xf32> to vector<16x128xf32>
    %102 = vector.shape_cast %98 : vector<16x128xf32> to vector<1x16x128xf32>
    tpu.vector_store %arg6[%c0_43, %c0_44, %99], %102 {strides = array<i32>} : memref<1x16x512xf32, #tpu.memory_space<vmem>>, vector<1x16x128xf32>,
    %c3_i32 = arith.constant 3 : i32
    %c128_i32_45 = arith.constant 128 : i32
    %103 = arith.muli %c3_i32, %c128_i32_45 : i32
    %104 = tpu.assume_multiple %103, 128 : i32
    %c0_46 = arith.constant 0 : index
    %105 = arith.index_cast %104 : i32 to index
    %106 = vector.load %arg7[%c0_46, %105] : memref<128x512xf32, #tpu.memory_space<vmem>>, vector<128x128xf32>
    %107 = vector.shape_cast %106 : vector<128x128xf32> to vector<16x8x128xf32>
    %c0_47 = arith.constant 0 : index
    %c0_48 = arith.constant 0 : index
    %108 = arith.index_cast %104 : i32 to index
    %109 = vector.load %arg2[%c0_47, %c0_48, %108] : memref<1x128x512xbf16, #tpu.memory_space<vmem>>, vector<1x128x128xbf16>
    %110 = vector.shape_cast %109 : vector<1x128x128xbf16> to vector<128x128xbf16>
    %111 = arith.extf %110 : vector<128x128xbf16> to vector<128x128xf32>
    %112 = vector.shape_cast %111 : vector<128x128xf32> to vector<16x8x128xf32>
    %cst_49 = arith.constant dense<0xFF800000> : vector<8x128xf32>
    %113 = vector.multi_reduction <maximumf>, %107, %cst_49 [0] : vector<16x8x128xf32> to vector<8x128xf32>
    %114 = vector.shape_cast %113 : vector<8x128xf32> to vector<1x8x128xf32>
    %115 = vector.broadcast %114 : vector<1x8x128xf32> to vector<16x8x128xf32>
    %116 = arith.subf %107, %115 : vector<16x8x128xf32>
    %117 = math.exp %116 : vector<16x8x128xf32>
    %cst_50 = arith.constant dense<0.000000e+00> : vector<8x128xf32>
    %118 = vector.multi_reduction <add>, %117, %cst_50 [0] : vector<16x8x128xf32> to vector<8x128xf32>
    %119 = arith.mulf %112, %117 : vector<16x8x128xf32>
    %cst_51 = arith.constant dense<0.000000e+00> : vector<8x128xf32>
    %120 = vector.multi_reduction <add>, %119, %cst_51 [0] : vector<16x8x128xf32> to vector<8x128xf32>
    %121 = tpu.reciprocal %118 {approx = true} : vector<8x128xf32> -> vector<8x128xf32>
    %122 = arith.mulf %120, %121 : vector<8x128xf32>
    %cst_52 = arith.constant dense<0.000000e+00> : vector<16x128xf32>
    %123 = tpu.matmul %5, %122, %cst_52 {dimension_numbers = #tpu.dot_dimension_numbers<[1], [0], [0], [1], [0, 0, 1, 1], [], []>} : vector<16x8xf32>, vector<8x128xf32>, vector<16x128xf32> -> vector<16x128xf32>
    %124 = vector.broadcast %6 : vector<16x1xf32> to vector<16x128xf32>
    %125 = arith.addf %123, %124 : vector<16x128xf32>
    %cst_53 = arith.constant 0.000000e+00 : f32
    %126 = vector.broadcast %cst_53 : f32 to vector<16x128xf32>
    %127 = arith.cmpf ogt, %125, %126 : vector<16x128xf32>
    %cst_54 = arith.constant 2.000000e-01 : f32
    %128 = vector.broadcast %cst_54 : f32 to vector<16x128xf32>
    %129 = arith.mulf %128, %125 : vector<16x128xf32>
    %130 = arith.select %127, %125, %129 : vector<16x128xi1>, vector<16x128xf32>
    %c0_55 = arith.constant 0 : index
    %c0_56 = arith.constant 0 : index
    %131 = arith.index_cast %104 : i32 to index
    %132 = vector.load %arg6[%c0_55, %c0_56, %131] : memref<1x16x512xf32, #tpu.memory_space<vmem>>, vector<1x16x128xf32>
    %133 = vector.shape_cast %132 : vector<1x16x128xf32> to vector<16x128xf32>
    %134 = vector.shape_cast %130 : vector<16x128xf32> to vector<1x16x128xf32>
    tpu.vector_store %arg6[%c0_55, %c0_56, %131], %134 {strides = array<i32>} : memref<1x16x512xf32, #tpu.memory_space<vmem>>, vector<1x16x128xf32>,
    %c4_i32 = arith.constant 4 : i32
    return
  }
  func.func @transform_0(%arg0: i32, %arg1: i32) -> (i32, i32, i32) {
    %c0_i32 = arith.constant 0 : i32
    %c0_i32_0 = arith.constant 0 : i32
    return %arg0, %c0_i32, %arg1 : i32, i32, i32
  }
  func.func @transform_1(%arg0: i32, %arg1: i32) -> (i32, i32) {
    %c0_i32 = arith.constant 0 : i32
    %c0_i32_0 = arith.constant 0 : i32
    %c0_i32_1 = arith.constant 0 : i32
    return %c0_i32, %c0_i32_0 : i32, i32
  }
  func.func @transform_2(%arg0: i32, %arg1: i32) -> (i32, i32) {
    %c0_i32 = arith.constant 0 : i32
    %c0_i32_0 = arith.constant 0 : i32
    %c0_i32_1 = arith.constant 0 : i32
    return %c0_i32, %c0_i32_0 : i32, i32
  }
  func.func @transform_3(%arg0: i32, %arg1: i32) -> (i32, i32) {
    %c0_i32 = arith.constant 0 : i32
    %c0_i32_0 = arith.constant 0 : i32
    %c0_i32_1 = arith.constant 0 : i32
    return %c0_i32, %c0_i32_0 : i32, i32
  }
  func.func @transform_4(%arg0: i32, %arg1: i32) -> (i32, i32, i32) {
    %c0_i32 = arith.constant 0 : i32
    %c0_i32_0 = arith.constant 0 : i32
    return %arg0, %c0_i32, %arg1 : i32, i32, i32
  }
}

</mosaic_0001>

<bundles_post_ra>
// kernel: tpu_custom_call.1
= control target key start
LH: loop header
LB: loop body
LE: loop exit
PB: predicated region body
PF: predicated region fallthrough
CT: control target
= control target key end

     0   :  { %9 = vsyncpa [#allocation4], 0  ;;  %s3852_s0 = inlined_call_operand.hbm [shape: bf16[2,128,512], index: 0, kind: input, shape index: {}]   ;;  %s3853_s1 = inlined_call_operand.hbm [shape: bf16[128,128], index: 1, kind: input, shape index: {}]   ;;  %s3854_s2 = inlined_call_operand.vmem [shape: f32[16,8], index: 2, kind: input, shape index: {}]   ;;  %s3855_s3 = inlined_call_operand.vmem [shape: f32[16,1], index: 3, kind: input, shape index: {}]   ;;  %s3856_s4 = inlined_call_operand.hbm [shape: f32[2,16,512], index: 4, kind: output, shape index: {}]  }
   0x1   :  { %11 = vsyncpa [#allocation4 + $0x1], 0 }
   0x2   :  { %12 = vsyncpa [#allocation7], 0 }
   0x3   :  { %13 = vsyncpa [#allocation5], 0 }
   0x4   :  { %15 = vsyncpa [#allocation5 + $0x1], 0  ;;  %s2517_s15 = smov 0   ;;  %s2519_s16 = smov 0  }
   0x5   :  { %s2521_s17 = smov 0   ;;  %s2523_s18 = smov 0  }
   0x6   :  { %s2525_s19 = smov 0   ;;  %s2527_s20 = smov 0  }
   0x7 LB: > { %s1909_s21 = sadd.s32 4294967295, %s2480_s20   ;;  %s1910_s22 = sadd.s32 4294967294, %s2480_s20   ;;  %s2480_s20 = sphi %s2527_s20, %s21_s20   ;;  %s2476_s19 = sphi %s2525_s19, %s4287_s19   ;;  %s2472_s18 = sphi %s2523_s18, %s4286_s18   ;;  %s2468_s17 = sphi %s2521_s17, %s4285_s17   ;;  %s2464_s16 = sphi %s2519_s16, %s4284_s16   ;;  %s2460_s15 = sphi %s2517_s15, %s4283_s15  }
   0x8   : > { %p55_p0 = scmp.ne.s32.totalorder %s2464_s16, %s2460_s15  ;;  %p2551_p1 = scmp.eq.s32.totalorder %s1909_s21, 0 }
   0x9   : > { %p2555_p2 = scmp.eq.s32.totalorder %s1909_s21, 1  ;;  %p150_p3 = scmp.eq.s32.totalorder %s1910_s22, 1 }
   0xa   : > { %s4004_s23 = scalar_select %p2551_p1, 1, 0 }
   0xb   : > { %s4005_s24 = scalar_select %p2555_p2, 1, 0 }
   0xc   : > { %p2561_p4 = por %p2551_p1, %p55_p0  ;;  %p1911_p5 = scmp.ge.s32.totalorder %s2480_s20, 1 }
   0xd   : > { %p2566_p6 = por %p150_p3, %p55_p0  ;;  %p157_p7 = scmp.lt.s32.totalorder %s2480_s20, 3 }
   0xe   : > { %s4006_s25 = scalar_select %p2561_p4, 1, 0 }
   0xf   : > { %s4007_s26 = scalar_select %p2566_p6, 1, 0 }
  0x10   : > { %p2571_p8 = pnand %p1911_p5, %p157_p7  ;;  %s2482_s28 = smov [#allocation6]  }
  0x11   : > { %s169_s29 = sshll.u32 %s2482_s28, 4  ;;  %s33_s5 = sadd.s32 1, %s2476_s19  ;;  %s170_s29 = int_to_ptr.vmem [resolvable:$true] %s169_s29 }
  0x12   : > { %s4008_s27 = scalar_select %p2571_p8, 1, 0 }
  0x13   : > { %p2070_p9 = pneg %p2571_p8  ;;  %s2336_s8 = scalar_lea.hbm %s3853_s1, 1024 }
  0x14   : > { %p2337_p12 = scmp.ne.s32.totalorder %s3853_s1, %s2336_s8  ;;  %p2343_p5 = scmp.lt.u32.totalorder %s2336_s8, %s3853_s1 }
  0x15   : > { %p2580_p11 = pnand %p2070_p9, %p2551_p1 }
  0x17   : > { %p2338_p13 = pneg %p2580_p11 }
  0x19   : > { %p2339_p0 = pnand %p2338_p13, %p2337_p12 }
  0x1b   : > { %p2340_p3 = pneg %p2339_p0 }
  0x1d   : > { %p2345_p7 = pnand %p2343_p5, %p2340_p3 }
  0x1f   : > { %2348 = shalt.err (!%p2345_p7)
}
  0x20   : > { %s2349_s13 = scalar_lea.vmem %s170_s29, 1024  ;;  %p2357_p1 = scmp.lt.s32.totalorder %s170_s29, %s170_s29 }
  0x21   : > { %p2350_p9 = scmp.ne.s32.totalorder %s170_s29, %s2349_s13  ;;  %p2358_p4 = scmp.lt.s32.totalorder %s2349_s13, %s2349_s13 }
  0x23   : > { %p2352_p10 = pnand %p2350_p9, %p2338_p13  ;;  %p2359_p8 = por %p2358_p4, %p2357_p1 }
  0x25   : > { %p2353_p6 = pneg %p2352_p10 }
  0x27   : > { %p2360_p2 = pnand %p2359_p8, %p2353_p6 }
  0x29   : > { %2363 = shalt.err (!%p2360_p2)
}
  0x2a   : > { %s2483_s14 = smov 64   ;;  %s2484_s21 = smov 4  }
  0x2b   : > { %2073 = dma.hbm_to_vmem [thread:$0]  (!%p2580_p11), %s3853_s1, 1024, %s170_s29, [#allocation7], %s2483_s14, %s2483_s14, %s2484_s21  }
  0x2c   : > { %p35_p1 = scmp.ge.s32.totalorder %s33_s5, 2  ;;  %s42_s6 = sadd.s32 1, %s2468_s17 }
  0x2d   : > { %p49_p2 = scmp.ne.s32.totalorder %s2468_s17, %s2464_s16  ;;  %p50_p4 = scmp.eq.s32.totalorder %s2480_s20, 0 }
  0x2e   : > { %s4289_s5 = smov (%p35_p1, %s33_s5), 0  ;;  %p4011_p8 = scmp.ne.s32.totalorder %s4005_s24, 0 }
  0x2f   : > { %p2607_p6 = por %p50_p4, %p49_p2  ;;  %s37_s30 = ssub.s32 %s2476_s19, %s4289_s5 }
  0x30   : > { %p2613_p10 = por %p4011_p8, %p49_p2  ;;  %p2083_p12 = scmp.lt.s32.totalorder %s2480_s20, 2 }
  0x31   : > { %p40_p11 = scmp.eq.s32.totalorder %s37_s30, 0  ;;  %s189_s29 = sand.u32 1, %s2468_s17  }
  0x32   : > { %s1914_s9 = sshll.u32 %s189_s29, 8  ;;  %s2028_s11 = sshll.u32 %s2476_s19, 12 }
  0x33   : > { %s2622_s10 = scalar_select %p40_p11, %s2468_s17, %s42_s6  }
  0x34   : > { %s2628_s14 = scalar_lea.hbm %s3852_s0, %s2028_s11  ;;  %s193_s24 = scalar_lea.vmem [#allocation3], %s1914_s9 }
  0x35   : > { %s202_s21 = sshll.u32 %s193_s24, 4  ;;  %p2634_p13 = pnand %p2083_p12, %p2607_p6  ;;  %s2630_s21 = int_to_ptr.vmem [resolvable:$true] %s202_s21 }
  0x36   : > { %s2638_s28 = scalar_lea.sflag [#allocation4], %s189_s29  ;;  %s2364_s6 = scalar_lea.hbm %s2628_s14, 4096 }
  0x37   : > { %p2365_p0 = scmp.ne.s32.totalorder %s2628_s14, %s2364_s6  ;;  %p2366_p3 = pneg %p2634_p13 }
  0x38   : > { %s2369_s7 = scalar_lea.hbm %s3852_s0, 8192  ;;  %p2370_p9 = scmp.lt.u32.totalorder %s2628_s14, %s3852_s0 }
  0x39   : > { %p2367_p5 = pnand %p2366_p3, %p2365_p0  ;;  %p2371_p1 = scmp.lt.u32.totalorder %s2369_s7, %s2364_s6 }
  0x3a   : > { %p2373_p4 = scmp.lt.u32.totalorder %s2364_s6, %s2628_s14 }
  0x3b   : > { %p2368_p7 = pneg %p2367_p5  ;;  %p2372_p2 = por %p2371_p1, %p2370_p9 }
  0x3d   : > { %p2374_p6 = por %p2373_p4, %p2372_p2 }
  0x3f   : > { %p2375_p8 = pnand %p2374_p6, %p2368_p7 }
  0x41   : > { %2378 = shalt.err (!%p2375_p8)
}
  0x42   : > { %s2379_s29 = scalar_lea.vmem %s2630_s21, 4096  ;;  %s2485_s13 = smov [#allocation3]  }
  0x43   : > { %p2380_p12 = scmp.ne.s32.totalorder %s2630_s21, %s2379_s29  ;;  %s2384_s24 = sshll.u32 %s2485_s13, 4  ;;  %s2385_s24 = int_to_ptr.vmem [resolvable:$false] %s2384_s24 }
  0x44   : > { %s2386_s30 = scalar_lea.vmem %s2385_s24, 8192  ;;  %p2387_p5 = scmp.lt.s32.totalorder %s2630_s21, %s2385_s24 }
  0x45   : > { %p2382_p11 = pnand %p2380_p12, %p2366_p3  ;;  %p2388_p9 = scmp.lt.s32.totalorder %s2386_s30, %s2379_s29 }
  0x47   : > { %p2383_p0 = pneg %p2382_p11  ;;  %p2389_p1 = por %p2388_p9, %p2387_p5 }
  0x49   : > { %p2390_p2 = pnand %p2389_p1, %p2383_p0 }
  0x4b   : > { %2393 = shalt.err (!%p2390_p2)
}
  0x4c   : > { %s2486_s6 = smov 256   ;;  %s2487_s9 = smov 16  }
  0x4d   : > { %2077 = dma.hbm_to_vmem [thread:$0]  (!%p2634_p13), %s2628_s14, 4096, %s2630_s21, %s2638_s28, %s2486_s6, %s2486_s6, %s2487_s9  }
  0x4e   : > { %p4014_p3 = scmp.ne.s32.totalorder %s4008_s27, 0 }
  0x50   : > { %214 = sbr.rel (%p4014_p3) target bundleno = 770 (0x302), region = 36 }
  0x57   : > { %s2669_s7 = sand.u32 1, %s2464_s16   ;;  %p4015_p7 = scmp.ne.s32.totalorder %s4006_s25, 0 }
  0x58   : > { %s1918_s11 = sshll.u32 %s2669_s7, 8  ;;  %s217_s12 = scalar_lea.sflag [#allocation4], %s2669_s7 }
  0x59   : > { %s2673_s29 = scalar_lea.vmem [#allocation3], %s1918_s11 }
  0x5a   : > { %2447 = dma.done.wait (%p4015_p7), %s217_s12, 4096  }
  0x5b   : > { %2449 = vsyncadd (%p4015_p7), %s217_s12, 4294963200  ;;  %p4016_p13 = scmp.ne.s32.totalorder %s4004_s23, 0 }
  0x5d   : > { %2451 = dma.done.wait (%p4016_p13), [#allocation7], 1024  }
  0x5e   : > { %2453 = vsyncadd (%p4016_p13), [#allocation7], 4294966272  ;;  %v2488_v0 = vmov 0   ;;  %v2143_v1 = vld [vmem:[%s2673_s29 + $0x4] ss:$16 sps:$4 sm:$0xff]   ;;  %v2192_v34 = vld [vmem:[#allocation6 + $0x8] sm:$0xff]  }
  0x5f   : > { %540 = vmatprep.mubr.bf16.mxu0 %v2488_v0  ;;  %653 = vmatprep.mubr.bf16.mxu1 %v2488_v0  ;;  %v2145_v2 = vld [vmem:[%s2673_s29 + $0xc] ss:$16 sps:$4 sm:$0xff]   ;;  %v2147_v3 = vld [vmem:[%s2673_s29] ss:$16 sps:$4 sm:$0xff]   ;;  %v2148_v4 = vld [vmem:[%s2673_s29 + $0x8] ss:$16 sps:$4 sm:$0xff]  }
  0x60   : > { %2142 = vset.pattern.permute.xlu0 %v2488_v0  ;;  %508 = vmatprep.subr.bf16.mxu0 %v2143_v1  ;;  %v2149_v5 = vld [vmem:[%s2673_s29 + $0x24] ss:$16 sps:$4 sm:$0xff]   ;;  %v2151_v6 = vld [vmem:[%s2673_s29 + $0x2c] ss:$16 sps:$4 sm:$0xff]   ;;  %v2153_v7 = vld [vmem:[%s2673_s29 + $0x20] ss:$16 sps:$4 sm:$0xff]  }
  0x61   : > { %621 = vmatprep.subr.bf16.mxu1 %v2145_v2  ;;  %509 = vmatpush1.bf16.msra.mxu0 %v2147_v3  ;;  %v2154_v8 = vld [vmem:[%s2673_s29 + $0x28] ss:$16 sps:$4 sm:$0xff]   ;;  %v2155_v9 = vld [vmem:[%s2673_s29 + $0x44] ss:$16 sps:$4 sm:$0xff]   ;;  %v2157_v10 = vld [vmem:[%s2673_s29 + $0x4c] ss:$16 sps:$4 sm:$0xff]  }
  0x62   : > { %622 = vmatpush1.bf16.msra.mxu1 %v2148_v4  ;;  %510 = vmatprep.subr.bf16.mxu0 %v2149_v5  ;;  %v2159_v11 = vld [vmem:[%s2673_s29 + $0x40] ss:$16 sps:$4 sm:$0xff]   ;;  %v2160_v12 = vld [vmem:[%s2673_s29 + $0x48] ss:$16 sps:$4 sm:$0xff]   ;;  %v2161_v13 = vld [vmem:[%s2673_s29 + $0x64] ss:$16 sps:$4 sm:$0xff]  }
  0x63   : > { %623 = vmatprep.subr.bf16.mxu1 %v2151_v6  ;;  %v2163_v14 = vld [vmem:[%s2673_s29 + $0x6c] ss:$16 sps:$4 sm:$0xff]   ;;  %v2165_v15 = vld [vmem:[%s2673_s29 + $0x60] ss:$16 sps:$4 sm:$0xff]   ;;  %v2166_v16 = vld [vmem:[%s2673_s29 + $0x68] ss:$16 sps:$4 sm:$0xff]  }
  0x64   : > { %v2167_v17 = vld [vmem:[%s2673_s29 + $0x84] ss:$16 sps:$4 sm:$0xff]   ;;  %v2169_v18 = vld [vmem:[%s2673_s29 + $0x8c] ss:$16 sps:$4 sm:$0xff]   ;;  %v2171_v19 = vld [vmem:[%s2673_s29 + $0x80] ss:$16 sps:$4 sm:$0xff]  }
  0x65   : > { %511 = vmatpush1.bf16.msra.mxu0 %v2153_v7  ;;  %v2172_v20 = vld [vmem:[%s2673_s29 + $0x88] ss:$16 sps:$4 sm:$0xff]   ;;  %v2173_v21 = vld [vmem:[%s2673_s29 + $0xa4] ss:$16 sps:$4 sm:$0xff]   ;;  %v2175_v22 = vld [vmem:[%s2673_s29 + $0xac] ss:$16 sps:$4 sm:$0xff]  }
  0x66   : > { %624 = vmatpush1.bf16.msra.mxu1 %v2154_v8  ;;  %512 = vmatprep.subr.bf16.mxu0 %v2155_v9  ;;  %v2177_v23 = vld [vmem:[%s2673_s29 + $0xa0] ss:$16 sps:$4 sm:$0xff]   ;;  %v2178_v24 = vld [vmem:[%s2673_s29 + $0xa8] ss:$16 sps:$4 sm:$0xff]   ;;  %v2179_v25 = vld [vmem:[%s2673_s29 + $0xc4] ss:$16 sps:$4 sm:$0xff]  }
  0x67   : > { %625 = vmatprep.subr.bf16.mxu1 %v2157_v10  ;;  %v2181_v26 = vld [vmem:[%s2673_s29 + $0xcc] ss:$16 sps:$4 sm:$0xff]   ;;  %v2183_v27 = vld [vmem:[%s2673_s29 + $0xc0] ss:$16 sps:$4 sm:$0xff]   ;;  %v2184_v28 = vld [vmem:[%s2673_s29 + $0xc8] ss:$16 sps:$4 sm:$0xff]  }
  0x68   : > { %v2185_v29 = vld [vmem:[%s2673_s29 + $0xe4] ss:$16 sps:$4 sm:$0xff]   ;;  %v2187_v30 = vld [vmem:[%s2673_s29 + $0xec] ss:$16 sps:$4 sm:$0xff]   ;;  %v2189_v31 = vld [vmem:[%s2673_s29 + $0xe0] ss:$16 sps:$4 sm:$0xff]  }
  0x69   : > { %513 = vmatpush1.bf16.msra.mxu0 %v2159_v11  ;;  %v2190_v32 = vld [vmem:[%s2673_s29 + $0xe8] ss:$16 sps:$4 sm:$0xff]   ;;  %v2191_v33 = vld [vmem:[#allocation6] sm:$0xff]   ;;  %v2193_v35 = vld [vmem:[#allocation6 + $0x10] sm:$0xff]   ;;  %vm971_vm0 = vcmask 64512   ;;  %s1920_s6 = sshll.u32 %s2669_s7, 6 }
  0x6a   : > { %626 = vmatpush1.bf16.msra.mxu1 %v2160_v12  ;;  %514 = vmatprep.subr.bf16.mxu0 %v2161_v13  ;;  %v2194_v36 = vld [vmem:[#allocation6 + $0x18] sm:$0xff]   ;;  %v2195_v37 = vld [vmem:[#allocation6 + $0x20] sm:$0xff]   ;;  %v2196_v38 = vld [vmem:[#allocation6 + $0x28] sm:$0xff]   ;;  %s3786_s9 = scalar_lea.vmem [#allocation8], %s1920_s6  ;;  %s2029_s12 = sshll.u32 %s2472_s18, 10 }
  0x6b   : > { %627 = vmatprep.subr.bf16.mxu1 %v2163_v14  ;;  %v2197_v39 = vld [vmem:[#allocation6 + $0x30] sm:$0xff]   ;;  %v2198_v40 = vld [vmem:[#allocation6 + $0x38] sm:$0xff]   ;;  %s1812_s11 = sshll.u32 %s3786_s9, 4  ;;  %s3801_s25 = scalar_lea.hbm %s3856_s4, %s2029_s12  ;;  %s3796_s11 = int_to_ptr.vmem [resolvable:$true] %s1812_s11 }
  0x6c   : > { %s1797_s18 = scalar_lea.sflag [#allocation5], %s2669_s7  ;;  %s2394_s27 = scalar_lea.vmem %s3796_s11, 1024 }
  0x6d   : > { %515 = vmatpush1.bf16.msra.mxu0 %v2165_v15  ;;  %p2395_p4 = scmp.ne.s32.totalorder %s3796_s11, %s2394_s27  ;;  %s2489_s14 = smov [#allocation8]  }
  0x6e   : > { %628 = vmatpush1.bf16.msra.mxu1 %v2166_v16  ;;  %516 = vmatprep.subr.bf16.mxu0 %v2167_v17  ;;  %s2398_s21 = sshll.u32 %s2489_s14, 4  ;;  %s2399_s21 = int_to_ptr.vmem [resolvable:$false] %s2398_s21 }
  0x6f   : > { %629 = vmatprep.subr.bf16.mxu1 %v2169_v18  ;;  %p2396_p6 = pnand %p2395_p4, %p2613_p10  ;;  %s2400_s22 = scalar_lea.vmem %s2399_s21, 2048 }
  0x70   : > { %p2401_p12 = scmp.lt.s32.totalorder %s3796_s11, %s2399_s21  ;;  %p2402_p11 = scmp.lt.s32.totalorder %s2400_s22, %s2394_s27 }
  0x71   : > { %517 = vmatpush1.bf16.msra.mxu0 %v2171_v19  ;;  %p2397_p8 = pneg %p2396_p6 }
  0x72   : > { %630 = vmatpush1.bf16.msra.mxu1 %v2172_v20  ;;  %518 = vmatprep.subr.bf16.mxu0 %v2173_v21  ;;  %p2403_p0 = por %p2402_p11, %p2401_p12 }
  0x73   : > { %631 = vmatprep.subr.bf16.mxu1 %v2175_v22 }
  0x74   : > { %p2404_p5 = pnand %p2403_p0, %p2397_p8 }
  0x75   : > { %519 = vmatpush1.bf16.msra.mxu0 %v2177_v23 }
  0x76   : > { %632 = vmatpush1.bf16.msra.mxu1 %v2178_v24  ;;  %520 = vmatprep.subr.bf16.mxu0 %v2179_v25 }
  0x77   : > { %633 = vmatprep.subr.bf16.mxu1 %v2181_v26 }
  0x79   : > { %521 = vmatpush1.bf16.msra.mxu0 %v2183_v27 }
  0x7a   : > { %634 = vmatpush1.bf16.msra.mxu1 %v2184_v28  ;;  %522 = vmatprep.subr.bf16.mxu0 %v2185_v29 }
  0x7b   : > { %635 = vmatprep.subr.bf16.mxu1 %v2187_v30 }
  0x7d   : > { %523 = vmatpush1.bf16.msra.mxu0 %v2189_v31 }
  0x7e   : > { %636 = vmatpush1.bf16.msra.mxu1 %v2190_v32 }
  0x80   : > { %541 = vmatmul.mubr.bf16.vlgmr.msra.gmra.mrb[0].mxu0 %v2191_v33 }
  0x81   : > { %654 = vmatmul.mubr.bf16.vlgmr.msra.gmra.mrb[0].mxu1 %v2191_v33  ;;  %550 = vmatprep.mubr.bf16.mxu0 %v2488_v0 }
  0x82   : > { %663 = vmatprep.mubr.bf16.mxu1 %v2488_v0 }
  0x88   : > { %551 = vmatmul.mubr.bf16.gmra.mrb[4].mxu0 %v2192_v34 }
  0x89   : > { %664 = vmatmul.mubr.bf16.gmra.mrb[4].mxu1 %v2192_v34  ;;  %560 = vmatprep.mubr.bf16.mxu0 %v2488_v0 }
  0x8a   : > { %673 = vmatprep.mubr.bf16.mxu1 %v2488_v0 }
  0x90   : > { %561 = vmatmul.mubr.bf16.gmra.mrb[8].mxu0 %v2193_v35 }
  0x91   : > { %674 = vmatmul.mubr.bf16.gmra.mrb[8].mxu1 %v2193_v35  ;;  %570 = vmatprep.mubr.bf16.mxu0 %v2488_v0 }
  0x92   : > { %683 = vmatprep.mubr.bf16.mxu1 %v2488_v0 }
  0x98   : > { %571 = vmatmul.mubr.bf16.gmra.mrb[12].mxu0 %v2194_v36 }
  0x99   : > { %684 = vmatmul.mubr.bf16.gmra.mrb[12].mxu1 %v2194_v36  ;;  %580 = vmatprep.mubr.bf16.mxu0 %v2488_v0 }
  0x9a   : > { %693 = vmatprep.mubr.bf16.mxu1 %v2488_v0 }
  0xa0   : > { %581 = vmatmul.mubr.bf16.gmra.mrb[16].mxu0 %v2195_v37 }
  0xa1   : > { %694 = vmatmul.mubr.bf16.gmra.mrb[16].mxu1 %v2195_v37  ;;  %590 = vmatprep.mubr.bf16.mxu0 %v2488_v0 }
  0xa2   : > { %703 = vmatprep.mubr.bf16.mxu1 %v2488_v0 }
  0xa8   : > { %591 = vmatmul.mubr.bf16.gmra.mrb[20].mxu0 %v2196_v38 }
  0xa9   : > { %704 = vmatmul.mubr.bf16.gmra.mrb[20].mxu1 %v2196_v38  ;;  %600 = vmatprep.mubr.bf16.mxu0 %v2488_v0 }
  0xaa   : > { %713 = vmatprep.mubr.bf16.mxu1 %v2488_v0 }
  0xb0   : > { %601 = vmatmul.mubr.bf16.gmra.mrb[24].mxu0 %v2197_v39 }
  0xb1   : > { %714 = vmatmul.mubr.bf16.gmra.mrb[24].mxu1 %v2197_v39  ;;  %610 = vmatprep.mubr.bf16.mxu0 %v2488_v0  ;;  %v798_v39 = vld [vmem:[%s3854_s2] sm:$0xff] }
  0xb2   : > { %723 = vmatprep.mubr.bf16.mxu1 %v2488_v0 }
  0xb8   : > { %611 = vmatmul.mubr.bf16.gmra.mrb[28].mxu0 %v2198_v40 }
  0xb9   : > { %724 = vmatmul.mubr.bf16.gmra.mrb[28].mxu1 %v2198_v40  ;;  %2044 = vmatprep.mubr.msk.f32.mxu0 %vm971_vm0, %v798_v39 }
  0xba   : > { %2049 = vmatprep.mubr.msk.f32.mxu1 %vm971_vm0, %v798_v39 }
 0x153   : > { %v2732_v41 = vpop.f32.mrb[0].mxu0 }
 0x154   : > { %v2734_v42 = vpop.f32.mrb[0].mxu1  ;;  %v2736_v43 = vpop.f32.mrb[1].mxu0 }
 0x155   : > { %4017 = vst [vmem:[#allocation12_spill] sm:$0xff] %v2736_v43  ;;  %v2738_v44 = vpop.f32.mrb[1].mxu1  ;;  %v2740_v45 = vpop.f32.mrb[2].mxu0 }
 0x156   : > { %4018 = vst [vmem:[#allocation13_spill] sm:$0xff] %v2738_v44  ;;  %v2742_v46 = vpop.f32.mrb[2].mxu1  ;;  %v2744_v47 = vpop.f32.mrb[3].mxu0 }
 0x157   : > { %4019 = vst [vmem:[#allocation14_spill] sm:$0xff] %v2744_v47  ;;  %v2746_v48 = vpop.f32.mrb[3].mxu1 }
 0x158   : > { %4020 = vst [vmem:[#allocation15_spill] sm:$0xff] %v2746_v48 }
 0x15b   : > { %v2748_v49 = vpop.f32.mrb[4].mxu0 }
 0x15c   : > { %v2750_v50 = vpop.f32.mrb[4].mxu1  ;;  %v2752_v51 = vpop.f32.mrb[5].mxu0 }
 0x15d   : > { %4021 = vst [vmem:[#allocation16_spill] sm:$0xff] %v2752_v51  ;;  %v2754_v52 = vpop.f32.mrb[5].mxu1  ;;  %v2756_v53 = vpop.f32.mrb[6].mxu0 }
 0x15e   : > { %4022 = vst [vmem:[#allocation17_spill] sm:$0xff] %v2754_v52  ;;  %v2758_v54 = vpop.f32.mrb[6].mxu1  ;;  %v2760_v55 = vpop.f32.mrb[7].mxu0 }
 0x15f   : > { %4023 = vst [vmem:[#allocation18_spill] sm:$0xff] %v2760_v55  ;;  %v2762_v56 = vpop.f32.mrb[7].mxu1 }
 0x160   : > { %4024 = vst [vmem:[#allocation19_spill] sm:$0xff] %v2762_v56 }
 0x163   : > { %v2764_v57 = vpop.f32.mrb[8].mxu0 }
 0x164   : > { %v2766_v58 = vpop.f32.mrb[8].mxu1  ;;  %v850_v59 = vmax.f32 %v2732_v41, %v2764_v57  ;;  %v2770_v60 = vpop.f32.mrb[9].mxu0 }
 0x165   : > { %4025 = vst [vmem:[#allocation20_spill] sm:$0xff] %v2770_v60  ;;  %v1356_v61 = vmax.f32 %v2734_v42, %v2766_v58  ;;  %v2774_v62 = vpop.f32.mrb[9].mxu1  ;;  %v1111_v63 = vmax.f32 %v2736_v43, %v2770_v60  ;;  %v2778_v0 = vpop.f32.mrb[10].mxu0  ;;  %v2980_v43 = vld [vmem:[%s2673_s29 + $0xd0] sm:$0xff]   ;;  %v801_v60 = vld [vmem:[%s3855_s3 + $0x8] sm:$0xff] }
 0x166   : > { %4026 = vst [vmem:[#allocation21_spill] sm:$0xff] %v2774_v62  ;;  %v1601_v1 = vmax.f32 %v2738_v44, %v2774_v62  ;;  %v2782_v2 = vpop.f32.mrb[10].mxu1  ;;  %v851_v3 = vmax.f32 %v2740_v45, %v2778_v0  ;;  %v2786_v4 = vpop.f32.mrb[11].mxu0  ;;  %4067 = vst [vmem:[#allocation62_spill] sm:$0xff] %v2980_v43 }
 0x167   : > { %4027 = vst [vmem:[#allocation22_spill] sm:$0xff] %v2782_v2  ;;  %4028 = vst [vmem:[#allocation23_spill] sm:$0xff] %v2786_v4  ;;  %v1357_v5 = vmax.f32 %v2742_v46, %v2782_v2  ;;  %v2790_v6 = vpop.f32.mrb[11].mxu1  ;;  %v1112_v7 = vmax.f32 %v2744_v47, %v2786_v4  ;;  %v2952_v4 = vld [vmem:[%s2673_s29 + $0xa0] sm:$0xff]  }
 0x168   : > { %4029 = vst [vmem:[#allocation24_spill] sm:$0xff] %v2790_v6  ;;  %v1602_v8 = vmax.f32 %v2746_v48, %v2790_v6  ;;  %4061 = vst [vmem:[#allocation56_spill] sm:$0xff] %v2952_v4 }
 0x16b   : > { %v2796_v9 = vpop.f32.mrb[12].mxu0 }
 0x16c   : > { %v2798_v10 = vpop.f32.mrb[12].mxu1  ;;  %v852_v11 = vmax.f32 %v2748_v49, %v2796_v9  ;;  %v2802_v12 = vpop.f32.mrb[13].mxu0 }
 0x16d   : > { %4030 = vst [vmem:[#allocation25_spill] sm:$0xff] %v2798_v10  ;;  %4031 = vst [vmem:[#allocation26_spill] sm:$0xff] %v2802_v12  ;;  %v1358_v13 = vmax.f32 %v2750_v50, %v2798_v10  ;;  %v2806_v14 = vpop.f32.mrb[13].mxu1  ;;  %v1113_v15 = vmax.f32 %v2752_v51, %v2802_v12  ;;  %v2810_v16 = vpop.f32.mrb[14].mxu0 }
 0x16e   : > { %4032 = vst [vmem:[#allocation27_spill] sm:$0xff] %v2806_v14  ;;  %v1603_v17 = vmax.f32 %v2754_v52, %v2806_v14  ;;  %v2814_v18 = vpop.f32.mrb[14].mxu1  ;;  %v853_v19 = vmax.f32 %v2756_v53, %v2810_v16  ;;  %v2818_v20 = vpop.f32.mrb[15].mxu0 }
 0x16f   : > { %4033 = vst [vmem:[#allocation28_spill] sm:$0xff] %v2814_v18  ;;  %4034 = vst [vmem:[#allocation29_spill] sm:$0xff] %v2818_v20  ;;  %v1359_v21 = vmax.f32 %v2758_v54, %v2814_v18  ;;  %v2822_v22 = vpop.f32.mrb[15].mxu1  ;;  %v1114_v23 = vmax.f32 %v2760_v55, %v2818_v20  ;;  %v2940_v20 = vld [vmem:[%s2673_s29 + $0x60] sm:$0xff]  }
 0x170   : > { %4035 = vst [vmem:[#allocation30_spill] sm:$0xff] %v2822_v22  ;;  %v1604_v24 = vmax.f32 %v2762_v56, %v2822_v22  ;;  %4057 = vst [vmem:[#allocation52_spill] sm:$0xff] %v2940_v20  ;;  %v800_v55 = vld [vmem:[%s3855_s3] sm:$0xff] }
 0x171   : > { %963 = vperm.xlu0 %2142, %v800_v55  }
 0x173   : > { %v2828_v25 = vpop.f32.mrb[16].mxu0 }
 0x174   : > { %v2830_v26 = vpop.f32.mrb[16].mxu1  ;;  %v854_v27 = vmax.f32 %v850_v59, %v2828_v25  ;;  %v2833_v28 = vpop.f32.mrb[17].mxu0 }
 0x175   : > { %4036 = vst [vmem:[#allocation31_spill] sm:$0xff] %v2830_v26  ;;  %4037 = vst [vmem:[#allocation32_spill] sm:$0xff] %v2833_v28  ;;  %v1360_v29 = vmax.f32 %v1356_v61, %v2830_v26  ;;  %v2836_v30 = vpop.f32.mrb[17].mxu1  ;;  %v1115_v31 = vmax.f32 %v1111_v63, %v2833_v28  ;;  %v2839_v32 = vpop.f32.mrb[18].mxu0  ;;  %v2937_v28 = vld [vmem:[%s2673_s29 + $0x50] sm:$0xff]   ;;  %968 = vperm.xlu0 %2142, %v801_v60  }
 0x176   : > { %4038 = vst [vmem:[#allocation33_spill] sm:$0xff] %v2836_v30  ;;  %v1605_v33 = vmax.f32 %v1601_v1, %v2836_v30  ;;  %v2842_v34 = vpop.f32.mrb[18].mxu1  ;;  %v855_v35 = vmax.f32 %v851_v3, %v2839_v32  ;;  %v2845_v36 = vpop.f32.mrb[19].mxu0  ;;  %4056 = vst [vmem:[#allocation51_spill] sm:$0xff] %v2937_v28 }
 0x177   : > { %4039 = vst [vmem:[#allocation34_spill] sm:$0xff] %v2842_v34  ;;  %4040 = vst [vmem:[#allocation35_spill] sm:$0xff] %v2845_v36  ;;  %v1361_v37 = vmax.f32 %v1357_v5, %v2842_v34  ;;  %v2848_v38 = vpop.f32.mrb[19].mxu1  ;;  %v1116_v40 = vmax.f32 %v1112_v7, %v2845_v36  ;;  %v2934_v36 = vld [vmem:[%s2673_s29 + $0x40] sm:$0xff]  }
 0x178   : > { %4041 = vst [vmem:[#allocation36_spill] sm:$0xff] %v2848_v38  ;;  %v1606_v59 = vmax.f32 %v1602_v8, %v2848_v38  ;;  %4055 = vst [vmem:[#allocation50_spill] sm:$0xff] %v2934_v36 }
 0x17b   : > { %v2857_v61 = vpop.f32.mrb[20].mxu0 }
 0x17c   : > { %v2859_v63 = vpop.f32.mrb[20].mxu1  ;;  %v2862_v1 = vmax.f32 %v852_v11, %v2857_v61  ;;  %v2864_v3 = vpop.f32.mrb[21].mxu0 }
 0x17d   : > { %4042 = vst [vmem:[#allocation37_spill] sm:$0xff] %v2859_v63  ;;  %4043 = vst [vmem:[#allocation38_spill] sm:$0xff] %v2864_v3  ;;  %v2867_v5 = vmax.f32 %v1358_v13, %v2859_v63  ;;  %v2869_v30 = vpop.f32.mrb[21].mxu1  ;;  %v2872_v7 = vmax.f32 %v1113_v15, %v2864_v3  ;;  %v2874_v8 = vpop.f32.mrb[22].mxu0 }
 0x17e   : > { %4044 = vst [vmem:[#allocation39_spill] sm:$0xff] %v2869_v30  ;;  %v2877_v39 = vmax.f32 %v1603_v17, %v2869_v30  ;;  %v2879_v38 = vpop.f32.mrb[22].mxu1  ;;  %v2882_v11 = vmax.f32 %v853_v19, %v2874_v8  ;;  %v2884_v22 = vpop.f32.mrb[23].mxu0  ;;  %v4101_v43 = vld [vmem:[#allocation35_spill] sm:$0xff] }
 0x17f   : > { %4045 = vst [vmem:[#allocation40_spill] sm:$0xff] %v2879_v38  ;;  %4046 = vst [vmem:[#allocation41_spill] sm:$0xff] %v2884_v22  ;;  %v2887_v13 = vmax.f32 %v1359_v21, %v2879_v38  ;;  %v2889_v14 = vpop.f32.mrb[23].mxu1  ;;  %v2892_v15 = vmax.f32 %v1114_v23, %v2884_v22  ;;  %v2928_v22 = vld [vmem:[%s2673_s29 + $0x20] sm:$0xff]  }
 0x180   : > { %4047 = vst [vmem:[#allocation42_spill] sm:$0xff] %v2889_v14  ;;  %v2895_v6 = vmax.f32 %v1604_v24, %v2889_v14 }
 0x183   : > { %v2897_v17 = vpop.f32.mrb[24].mxu0 }
 0x184   : > { %v2899_v30 = vpop.f32.mrb[24].mxu1  ;;  %v858_v19 = vmax.f32 %v854_v27, %v2897_v17  ;;  %v2902_v62 = vpop.f32.mrb[25].mxu0 }
 0x185   : > { %4048 = vst [vmem:[#allocation43_spill] sm:$0xff] %v2899_v30  ;;  %4049 = vst [vmem:[#allocation44_spill] sm:$0xff] %v2902_v62  ;;  %v1364_v21 = vmax.f32 %v1360_v29, %v2899_v30  ;;  %v2905_v56 = vpop.f32.mrb[25].mxu1  ;;  %v1119_v23 = vmax.f32 %v1115_v31, %v2902_v62  ;;  %v2908_v24 = vpop.f32.mrb[26].mxu0  ;;  %v2920_v31 = vld [vmem:[%s2673_s29] sm:$0xff]   ;;  %v2999_v30 = vld [vmem:[%s2673_s29 + $0xf0] sm:$0xff]  }
 0x186   : > { %4050 = vst [vmem:[#allocation45_spill] sm:$0xff] %v2905_v56  ;;  %v1609_v14 = vmax.f32 %v1605_v33, %v2905_v56  ;;  %v2911_v52 = vpop.f32.mrb[26].mxu1  ;;  %v859_v27 = vmax.f32 %v855_v35, %v2908_v24  ;;  %v2914_v48 = vpop.f32.mrb[27].mxu0  ;;  %v2925_v56 = vld [vmem:[%s2673_s29 + $0x10] sm:$0xff]   ;;  %4070 = vst [vmem:[#allocation65_spill] sm:$0xff] %v2999_v30 }
 0x187   : > { %4051 = vst [vmem:[#allocation46_spill] sm:$0xff] %v2911_v52  ;;  %4052 = vst [vmem:[#allocation47_spill] sm:$0xff] %v2914_v48  ;;  %v1365_v29 = vmax.f32 %v1361_v37, %v2911_v52  ;;  %v2917_v44 = vpop.f32.mrb[27].mxu1  ;;  %v1120_v62 = vmax.f32 %v1116_v40, %v2914_v48  ;;  %v2931_v35 = vld [vmem:[%s2673_s29 + $0x30] sm:$0xff]  }
 0x188   : > { %4053 = vst [vmem:[#allocation48_spill] sm:$0xff] %v2917_v44  ;;  %v1610_v33 = vmax.f32 %v1606_v59, %v2917_v44  ;;  %4054 = vst [vmem:[#allocation49_spill] sm:$0xff] %v2931_v35  ;;  %v862_v3 = vmax.f32 %v858_v19, %v859_v27  ;;  %v2943_v48 = vld [vmem:[%s2673_s29 + $0x70] sm:$0xff]   ;;  %v2946_v59 = vld [vmem:[%s2673_s29 + $0x80] sm:$0xff]  }
 0x189   : > { %v1368_v37 = vmax.f32 %v1364_v21, %v1365_v29  ;;  %v1123_v12 = vmax.f32 %v1119_v23, %v1120_v62  ;;  %4058 = vst [vmem:[#allocation53_spill] sm:$0xff] %v2943_v48  ;;  %4059 = vst [vmem:[#allocation54_spill] sm:$0xff] %v2946_v59  ;;  %v2949_v44 = vld [vmem:[%s2673_s29 + $0x90] sm:$0xff]   ;;  %v2965_v23 = vld [vmem:[%s2673_s29 + $0xc0] sm:$0xff]  }
 0x18a   : > { %v1613_v40 = vmax.f32 %v1609_v14, %v1610_v33  ;;  %4060 = vst [vmem:[#allocation55_spill] sm:$0xff] %v2949_v44  ;;  %v2962_v14 = vld [vmem:[%s2673_s29 + $0xb0] sm:$0xff]   ;;  %4064 = vst [vmem:[#allocation59_spill] sm:$0xff] %v2965_v23  ;;  %v2983_v33 = vld [vmem:[%s2673_s29 + $0xe0] sm:$0xff]  }
 0x18b   : > { %v2957_v29 = vpop.f32.mrb[28].mxu0  ;;  %4063 = vst [vmem:[#allocation58_spill] sm:$0xff] %v2962_v14  ;;  %4068 = vst [vmem:[#allocation63_spill] sm:$0xff] %v2983_v33  ;;  %v3110_v19 = vld [vmem:[%s2673_s29 + $0x38] sm:$0xff]   ;;  %v3198_v44 = vld [vmem:[%s2673_s29 + $0x88] sm:$0xff]  }
 0x18c   : > { %v2959_v62 = vpop.f32.mrb[28].mxu1  ;;  %v860_v27 = vmax.f32 %v2862_v1, %v2957_v29  ;;  %v2975_v51 = vpop.f32.mrb[29].mxu0  ;;  %v4106_v4 = vld [vmem:[#allocation44_spill] sm:$0xff]  ;;  %v3201_v59 = vld [vmem:[%s2673_s29 + $0x98] sm:$0xff]  }
 0x18d   : > { %4062 = vst [vmem:[#allocation57_spill] sm:$0xff] %v2959_v62  ;;  %v1366_v21 = vmax.f32 %v2867_v5, %v2959_v62  ;;  %4065 = vst [vmem:[#allocation60_spill] sm:$0xff] %v2975_v51  ;;  %v2977_v47 = vpop.f32.mrb[29].mxu1  ;;  %v1121_v1 = vmax.f32 %v2872_v7, %v2975_v51  ;;  %v2994_v62 = vpop.f32.mrb[30].mxu0 }
 0x18e   : > { %4066 = vst [vmem:[#allocation61_spill] sm:$0xff] %v2977_v47  ;;  %v1611_v5 = vmax.f32 %v2877_v39, %v2977_v47  ;;  %v2996_v52 = vpop.f32.mrb[30].mxu1  ;;  %v861_v38 = vmax.f32 %v2882_v11, %v2994_v62  ;;  %v3007_v51 = vpop.f32.mrb[31].mxu0  ;;  %v3078_v47 = vld [vmem:[%s2673_s29 + $0x8] sm:$0xff]   ;;  %v4110_v23 = vld [vmem:[#allocation47_spill] sm:$0xff] }
 0x18f   : > { %4069 = vst [vmem:[#allocation64_spill] sm:$0xff] %v2996_v52  ;;  %v1367_v7 = vmax.f32 %v2887_v13, %v2996_v52  ;;  %v3009_v39 = vpop.f32.mrb[31].mxu1  ;;  %v1122_v55 = vmax.f32 %v2892_v15, %v3007_v51  ;;  %v4077_v13 = vmov %v2859_v63  ;;  %v4079_v63 = vld [vmem:[#allocation43_spill] sm:$0xff] }
 0x190   : > { %4071 = vst [vmem:[#allocation66_spill] sm:$0xff] %v3009_v39  ;;  %v1612_v11 = vmax.f32 %v2895_v6, %v3009_v39  ;;  %v863_v52 = vmax.f32 %v860_v27, %v861_v38  ;;  %4107 = vst [vmem:[#allocation43_spill] sm:$0xff] %v3198_v44  ;;  %v4136_v44 = vld [vmem:[#allocation27_spill] sm:$0xff] }
 0x191   : > { %v1369_v34 = vmax.f32 %v1366_v21, %v1367_v7  ;;  %v1124_v26 = vmax.f32 %v1121_v1, %v1122_v55 }
 0x192   : > { %v1614_v18 = vmax.f32 %v1611_v5, %v1612_v11  ;;  %v3026_v15 = vmax.f32 %v862_v3, %v863_v52 }
 0x193   : > { %v3028_v6 = vmax.f32 %v1368_v37, %v1369_v34  ;;  %v3032_v21 = vmax.f32 %v1123_v12, %v1124_v26  ;;  %v4073_v37 = vmov %v2798_v10 }
 0x194   : > { %v3034_v27 = vmax.f32 %v1613_v40, %v1614_v18  ;;  %v865_v7 = vsub.f32 %v2732_v41, %v3026_v15  ;;  %v866_v52 = vsub.f32 %v2740_v45, %v3026_v15  ;;  %v867_v60 = vsub.f32 %v2748_v49, %v3026_v15 }
 0x195   : > { %v868_v34 = vsub.f32 %v2756_v53, %v3026_v15  ;;  %v869_v12 = vsub.f32 %v2764_v57, %v3026_v15  ;;  %v870_v18 = vsub.f32 %v2778_v0, %v3026_v15  ;;  %v871_v26 = vsub.f32 %v2796_v9, %v3026_v15 }
 0x196   : > { %v872_v41 = vsub.f32 %v2810_v16, %v3026_v15  ;;  %v873_v45 = vsub.f32 %v2828_v25, %v3026_v15  ;;  %v874_v49 = vsub.f32 %v2839_v32, %v3026_v15  ;;  %v875_v53 = vsub.f32 %v2857_v61, %v3026_v15  ;;  %v4083_v25 = vld [vmem:[#allocation57_spill] sm:$0xff]  ;;  %v4084_v61 = vld [vmem:[#allocation64_spill] sm:$0xff] }
 0x197   : > { %v876_v57 = vsub.f32 %v2874_v8, %v3026_v15  ;;  %v881_v3 = vmul.f32 1.442695, %v865_v7  ;;  %v883_v32 = vmul.f32 1.442695, %v866_v52  ;;  %v885_v8 = vmul.f32 1.442695, %v867_v60 }
 0x198   : > { %v1372_v40 = vsub.f32 %v2742_v46, %v3028_v6  ;;  %v887_v1 = vmul.f32 1.442695, %v868_v34  ;;  %v889_v46 = vmul.f32 1.442695, %v869_v12  ;;  %v891_v55 = vmul.f32 1.442695, %v870_v18 }
 0x199   : > { %2199 = vpow2.f32 %v881_v3  ;;  %v893_v5 = vmul.f32 1.442695, %v871_v26  ;;  %v1373_v52 = vsub.f32 %v2750_v50, %v3028_v6  ;;  %v1374_v34 = vsub.f32 %v2758_v54, %v3028_v6  ;;  %v4074_v26 = vld [vmem:[#allocation28_spill] sm:$0xff]  ;;  %v4075_v50 = vld [vmem:[#allocation31_spill] sm:$0xff]  ;;  %v3119_v54 = vld [vmem:[%s2673_s29 + $0x48] sm:$0xff]  }
 0x19a   : > { %2201 = vpow2.f32 %v883_v32  ;;  %v895_v32 = vmul.f32 1.442695, %v872_v41  ;;  %v1375_v12 = vsub.f32 %v2766_v58, %v3028_v6  ;;  %v4072_v18 = vmov %v2782_v2  ;;  %v4076_v41 = vld [vmem:[#allocation34_spill] sm:$0xff]  ;;  %v3104_v3 = vld [vmem:[%s2673_s29 + $0x18] sm:$0xff]   ;;  %v3107_v58 = vld [vmem:[%s2673_s29 + $0x28] sm:$0xff]   ;;  %4080 = vst [vmem:[#allocation22_spill] sm:$0xff] %v3119_v54 }
 0x19b   : > { %2203 = vpow2.f32 %v885_v8  ;;  %v897_v38 = vmul.f32 1.442695, %v873_v45  ;;  %v4078_v2 = vld [vmem:[#allocation40_spill] sm:$0xff]  ;;  %v3122_v60 = vld [vmem:[%s2673_s29 + $0x58] sm:$0xff]   ;;  %v4082_v7 = vld [vmem:[#allocation46_spill] sm:$0xff]  ;;  %v4086_v8 = vsub.f32 %v2897_v17, %v3026_v15  ;;  %v4088_v11 = vsub.f32 %v2957_v29, %v3026_v15 }
 0x19c   : > { %2205 = vpow2.f32 %v887_v1  ;;  %4081 = vst [vmem:[#allocation25_spill] sm:$0xff] %v3122_v60  ;;  %v3131_v16 = vld [vmem:[%s2673_s29 + $0x68] sm:$0xff]   ;;  %v901_v45 = vmul.f32 1.442695, %v875_v53  ;;  %v903_v1 = vmul.f32 1.442695, %v876_v57  ;;  %v4089_v57 = vsub.f32 %v2734_v42, %v3028_v6 }
 0x19d   : > { %2207 = vpow2.f32 %v889_v46  ;;  %4085 = vst [vmem:[#allocation28_spill] sm:$0xff] %v3131_v16  ;;  %v899_v46 = vmul.f32 1.442695, %v874_v49  ;;  %v905_v9 = vmul.f32 1.442695, %v4086_v8  ;;  %v4092_v60 = vld [vmem:[#allocation16_spill] sm:$0xff]  ;;  %v4116_v20 = vsub.f32 %v4072_v18, %v3028_v6 }
 0x19e   : > { %2209 = vpow2.f32 %v891_v55  ;;  %v909_v0 = vmul.f32 1.442695, %v4088_v11  ;;  %v1391_v33 = vmul.f32 1.442695, %v1373_v52  ;;  %v1393_v17 = vmul.f32 1.442695, %v1374_v34 }
 0x19f   : > { %2211 = vpow2.f32 %v893_v5  ;;  %v4087_v5 = vsub.f32 %v2908_v24, %v3026_v15  ;;  %v1395_v8 = vmul.f32 1.442695, %v1375_v12  ;;  %v4090_v24 = vld [vmem:[#allocation12_spill] sm:$0xff]  ;;  %v4091_v11 = vld [vmem:[#allocation14_spill] sm:$0xff]  ;;  %v1128_v42 = vsub.f32 %v4092_v60, %v3032_v21  ;;  %v4105_v60 = vld [vmem:[#allocation41_spill] sm:$0xff]  ;;  %4108 = vst [vmem:[#allocation46_spill] sm:$0xff] %v3201_v59 }
 0x1a0   : > { %2213 = vpow2.f32 %v895_v32  ;;  %v1387_v32 = vmul.f32 1.442695, %v4089_v57  ;;  %v1127_v16 = vsub.f32 %v4091_v11, %v3032_v21  ;;  %v4094_v52 = vld [vmem:[#allocation18_spill] sm:$0xff]  ;;  %v4095_v12 = vld [vmem:[#allocation20_spill] sm:$0xff]  ;;  %v4098_v11 = vld [vmem:[#allocation29_spill] sm:$0xff]  ;;  %v4119_v18 = vsub.f32 %v4074_v26, %v3028_v6 }
 0x1a1   : > { %2215 = vpow2.f32 %v897_v38  ;;  %v907_v49 = vmul.f32 1.442695, %v4087_v5  ;;  %v1389_v38 = vmul.f32 1.442695, %v1372_v40  ;;  %v1126_v5 = vsub.f32 %v4090_v24, %v3032_v21  ;;  %v4097_v24 = vld [vmem:[#allocation26_spill] sm:$0xff] }
 0x1a2   : > { %2217 = vpow2.f32 %v899_v46  ;;  %v1129_v34 = vsub.f32 %v4094_v52, %v3032_v21  ;;  %v4100_v52 = vld [vmem:[#allocation32_spill] sm:$0xff]  ;;  %v4114_v46 = vsub.f32 %v2994_v62, %v3026_v15  ;;  %v4117_v62 = vsub.f32 %v4073_v37, %v3028_v6 }
 0x1a3   : > { %v3138_v30 = vpop.eup %2199  ;;  %2219 = vpow2.f32 %v901_v45  ;;  %v4096_v45 = vld [vmem:[#allocation23_spill] sm:$0xff]  ;;  %v4124_v26 = vsub.f32 %v4078_v2, %v3028_v6  ;;  %v1146_v36 = vmul.f32 1.442695, %v1128_v42 }
 0x1a4   : > { %v3141_v55 = vpop.eup %2201  ;;  %2221 = vpow2.f32 %v903_v1  ;;  %v1399_v15 = vmul.f32 1.442695, %v4117_v62 }
 0x1a5   : > { %v913_v53 = vadd.f32 %v3141_v55, %v3138_v30  ;;  %v3157_v10 = vpop.eup %2203  ;;  %2223 = vpow2.f32 %v1387_v32  ;;  %v3188_v32 = vld [vmem:[%s2673_s29 + $0x78] sm:$0xff]  }
 0x1a6   : > { %v3166_v40 = vpop.eup %2205  ;;  %2225 = vpow2.f32 %v1389_v38  ;;  %4103 = vst [vmem:[#allocation37_spill] sm:$0xff] %v3188_v32  ;;  %v3212_v38 = vld [vmem:[%s2673_s29 + $0xa8] sm:$0xff]   ;;  %v4137_v32 = vld [vmem:[#allocation30_spill] sm:$0xff] }
 0x1a7   : > { %v914_v29 = vadd.f32 %v3157_v10, %v913_v53  ;;  %4093 = vst [vmem:[#allocation31_spill] sm:$0xff] %v3166_v40  ;;  %v3179_v54 = vpop.eup %2207  ;;  %2227 = vpow2.f32 %v905_v9  ;;  %v4111_v9 = vld [vmem:[#allocation60_spill] sm:$0xff]  ;;  %4112 = vst [vmem:[#allocation64_spill] sm:$0xff] %v3212_v38 }
 0x1a8   : > { %4099 = vst [vmem:[#allocation34_spill] sm:$0xff] %v3179_v54  ;;  %v3190_v14 = vpop.eup %2209  ;;  %2229 = vpow2.f32 %v1391_v33 }
 0x1a9   : > { %v915_v53 = vadd.f32 %v3166_v40, %v914_v29  ;;  %v4102_v29 = vld [vmem:[#allocation38_spill] sm:$0xff]  ;;  %4104 = vst [vmem:[#allocation40_spill] sm:$0xff] %v3190_v14  ;;  %v3203_v57 = vpop.eup %2211  ;;  %2231 = vpow2.f32 %v907_v49 }
 0x1aa   : > { %4109 = vst [vmem:[#allocation57_spill] sm:$0xff] %v3203_v57  ;;  %v3214_v28 = vpop.eup %2213  ;;  %2233 = vpow2.f32 %v1393_v17  ;;  %v4120_v17 = vsub.f32 %v4075_v50, %v3028_v6  ;;  %v4126_v50 = vsub.f32 %v4079_v63, %v3028_v6  ;;  %v4131_v63 = vld [vmem:[#allocation17_spill] sm:$0xff] }
 0x1ab   : > { %v916_v1 = vadd.f32 %v3179_v54, %v915_v53  ;;  %4113 = vst [vmem:[#allocation12_spill] sm:$0xff] %v3214_v28  ;;  %v911_v54 = vmul.f32 1.442695, %v4114_v46  ;;  %v3221_v48 = vpop.eup %2215  ;;  %v1397_v53 = vmul.f32 1.442695, %v4116_v20  ;;  %2235 = vpow2.f32 %v909_v0 }
 0x1ac   : > { %4115 = vst [vmem:[#allocation14_spill] sm:$0xff] %v3221_v48  ;;  %2237 = vpow2.f32 %v1395_v8  ;;  %v1401_v20 = vmul.f32 1.442695, %v4119_v18  ;;  %v1403_v35 = vmul.f32 1.442695, %v4120_v17  ;;  %v4121_v0 = vsub.f32 %v4076_v41, %v3028_v6 }
 0x1ad   : > { %v917_v33 = vadd.f32 %v3190_v14, %v916_v1  ;;  %v3233_v1 = vpop.eup %2217  ;;  %2239 = vpow2.f32 %v911_v54  ;;  %v4123_v8 = vsub.f32 %v4077_v13, %v3028_v6  ;;  %v1409_v18 = vmul.f32 1.442695, %v4124_v26  ;;  %v4135_v26 = vld [vmem:[#allocation24_spill] sm:$0xff] }
 0x1ae   : > { %4118 = vst [vmem:[#allocation16_spill] sm:$0xff] %v3233_v1  ;;  %v3244_v40 = vpop.eup %2219  ;;  %2241 = vpow2.f32 %v1397_v53  ;;  %v1411_v41 = vmul.f32 1.442695, %v4126_v50  ;;  %v1142_v17 = vmul.f32 1.442695, %v1126_v5  ;;  %v4130_v53 = vld [vmem:[#allocation15_spill] sm:$0xff] }
 0x1af   : > { %v918_v49 = vadd.f32 %v3203_v57, %v917_v33  ;;  %v1405_v33 = vmul.f32 1.442695, %v4121_v0  ;;  %4122 = vst [vmem:[#allocation18_spill] sm:$0xff] %v3244_v40  ;;  %v1407_v62 = vmul.f32 1.442695, %v4123_v8  ;;  %v3253_v46 = vpop.eup %2221  ;;  %v4128_v8 = vld [vmem:[#allocation13_spill] sm:$0xff]  ;;  %2243 = vpow2.f32 %v1399_v15 }
 0x1b0   : > { %4125 = vst [vmem:[#allocation20_spill] sm:$0xff] %v3253_v46  ;;  %v1144_v0 = vmul.f32 1.442695, %v1127_v16  ;;  %v3258_v54 = vpop.eup %2223  ;;  %v1148_v13 = vmul.f32 1.442695, %v1129_v34  ;;  %v4132_v16 = vld [vmem:[#allocation19_spill] sm:$0xff]  ;;  %2245 = vpow2.f32 %v1401_v20 }
 0x1b1   : > { %v919_v37 = vadd.f32 %v3214_v28, %v918_v49  ;;  %4127 = vst [vmem:[#allocation23_spill] sm:$0xff] %v3258_v54  ;;  %v3263_v2 = vpop.eup %2225  ;;  %2247 = vpow2.f32 %v1403_v35  ;;  %v4138_v35 = vld [vmem:[#allocation33_spill] sm:$0xff]  ;;  %v4140_v5 = vld [vmem:[#allocation36_spill] sm:$0xff]  ;;  %v4149_v28 = vsub.f32 %v4095_v12, %v3032_v21 }
 0x1b2   : > { %4129 = vst [vmem:[#allocation26_spill] sm:$0xff] %v3263_v2  ;;  %v3271_v59 = vpop.eup %2227  ;;  %v1419_v34 = vadd.f32 %v3263_v2, %v3258_v54  ;;  %2249 = vpow2.f32 %v1405_v33  ;;  %v4148_v2 = vsub.f32 %v4082_v7, %v3028_v6  ;;  %v4150_v7 = vsub.f32 %v4083_v25, %v3028_v6 }
 0x1b3   : > { %v920_v49 = vadd.f32 %v3221_v48, %v919_v37  ;;  %v4133_v37 = vld [vmem:[#allocation21_spill] sm:$0xff]  ;;  %v3278_v38 = vpop.eup %2229  ;;  %2251 = vpow2.f32 %v1407_v62  ;;  %v4141_v48 = vld [vmem:[#allocation39_spill] sm:$0xff]  ;;  %v1150_v57 = vmul.f32 1.442695, %v4149_v28  ;;  %v4152_v25 = vsub.f32 %v4084_v61, %v3028_v6 }
 0x1b4   : > { %4134 = vst [vmem:[#allocation29_spill] sm:$0xff] %v3278_v38  ;;  %v3286_v20 = vpop.eup %2231  ;;  %v1420_v15 = vadd.f32 %v3278_v38, %v1419_v34  ;;  %2253 = vpow2.f32 %v1142_v17  ;;  %v4143_v34 = vld [vmem:[#allocation45_spill] sm:$0xff]  ;;  %v3307_v62 = vld [vmem:[%s2673_s29 + $0xb8] sm:$0xff]   ;;  %v4155_v61 = vsub.f32 %v4098_v11, %v3032_v21 }
 0x1b5   : > { %v921_v42 = vadd.f32 %v3233_v1, %v920_v49  ;;  %v3292_v54 = vpop.eup %2233  ;;  %4144 = vst [vmem:[#allocation35_spill] sm:$0xff] %v3307_v62  ;;  %v3310_v38 = vld [vmem:[%s2673_s29 + $0xc8] sm:$0xff]   ;;  %2255 = vpow2.f32 %v1144_v0  ;;  %v4146_v1 = vld [vmem:[#allocation48_spill] sm:$0xff] }
 0x1b6   : > { %4139 = vst [vmem:[#allocation32_spill] sm:$0xff] %v3292_v54  ;;  %v3300_v14 = vpop.eup %2235  ;;  %4145 = vst [vmem:[#allocation38_spill] sm:$0xff] %v3310_v38  ;;  %2257 = vpow2.f32 %v1409_v18  ;;  %v1415_v18 = vmul.f32 1.442695, %v4150_v7  ;;  %v4196_v38 = vld [vmem:[#allocation40_spill] sm:$0xff] }
 0x1b7   : > { %v922_v49 = vadd.f32 %v3244_v40, %v921_v42  ;;  %v1421_v42 = vadd.f32 %v3292_v54, %v1420_v15  ;;  %v3312_v50 = vpop.eup %2237  ;;  %v4147_v40 = vld [vmem:[#allocation61_spill] sm:$0xff]  ;;  %v1413_v54 = vmul.f32 1.442695, %v4148_v2  ;;  %2259 = vpow2.f32 %v1146_v36 }
 0x1b8   : > { %v3320_v17 = vpop.eup %2239  ;;  %2261 = vpow2.f32 %v1411_v41  ;;  %v4151_v36 = vsub.f32 %v4096_v45, %v3032_v21  ;;  %v4153_v45 = vsub.f32 %v4097_v24, %v3032_v21  ;;  %v4157_v24 = vsub.f32 %v4100_v52, %v3032_v21 }
 0x1b9   : > { %v923_v33 = vadd.f32 %v3253_v46, %v922_v49  ;;  %v1422_v0 = vadd.f32 %v3312_v50, %v1421_v42  ;;  %v3327_v46 = vpop.eup %2241  ;;  %2263 = vpow2.f32 %v1148_v13  ;;  %v4161_v52 = vsub.f32 %v4106_v4, %v3032_v21 }
 0x1ba   : > { %v3339_v42 = vpop.eup %2243  ;;  %v1152_v28 = vmul.f32 1.442695, %v4151_v36  ;;  %2265 = vpow2.f32 %v1413_v54  ;;  %v1154_v7 = vmul.f32 1.442695, %v4153_v45 }
 0x1bb   : > { %v924_v49 = vadd.f32 %v3271_v59, %v923_v33  ;;  %v1423_v2 = vadd.f32 %v3327_v46, %v1422_v0  ;;  %v3346_v15 = vpop.eup %2245  ;;  %2267 = vpow2.f32 %v1150_v57 }
 0x1bc   : > { %v3353_v13 = vpop.eup %2247  ;;  %2269 = vpow2.f32 %v1415_v18  ;;  %v4159_v18 = vsub.f32 %v4102_v29, %v3032_v21 }
 0x1bd   : > { %v925_v33 = vadd.f32 %v3286_v20, %v924_v49  ;;  %v1417_v49 = vmul.f32 1.442695, %v4152_v25  ;;  %v1424_v0 = vadd.f32 %v3339_v42, %v1423_v2  ;;  %v3360_v12 = vpop.eup %2249  ;;  %2271 = vpow2.f32 %v1152_v28 }
 0x1be   : > { %4154 = vst [vmem:[#allocation41_spill] sm:$0xff] %v3360_v12  ;;  %v3367_v57 = vpop.eup %2251  ;;  %v1158_v2 = vmul.f32 1.442695, %v4157_v24  ;;  %v4158_v25 = vsub.f32 %v4101_v43, %v3032_v21  ;;  %v4160_v28 = vsub.f32 %v4105_v60, %v3032_v21  ;;  %v1166_v24 = vmul.f32 1.442695, %v4161_v52 }
 0x1bf   : > { %v926_v41 = vadd.f32 %v3300_v14, %v925_v33  ;;  %v1425_v6 = vadd.f32 %v3346_v15, %v1424_v0  ;;  %v1156_v33 = vmul.f32 1.442695, %v4155_v61  ;;  %4156 = vst [vmem:[#allocation44_spill] sm:$0xff] %v3367_v57  ;;  %v3378_v0 = vpop.eup %2253  ;;  %2273 = vpow2.f32 %v1417_v49 }
 0x1c0   : > { %v1160_v45 = vmul.f32 1.442695, %v4158_v25  ;;  %v1164_v61 = vmul.f32 1.442695, %v4160_v28  ;;  %v3387_v39 = vpop.eup %2255  ;;  %2275 = vpow2.f32 %v1154_v7  ;;  %v4162_v43 = vsub.f32 %v4110_v23, %v3032_v21 }
 0x1c1   : > { %v927_v54 = vadd.f32 %v3320_v17, %v926_v41  ;;  %v1162_v41 = vmul.f32 1.442695, %v4159_v18  ;;  %v1426_v11 = vadd.f32 %v3353_v13, %v1425_v6  ;;  %v4163_v49 = vsub.f32 %v4111_v9, %v3032_v21  ;;  %v3404_v4 = vpop.eup %2257 }
 0x1c2   : > { %v3392_v29 = vmul.f32 1.442695, %v4162_v43  ;;  %v4164_v60 = vsub.f32 %v3007_v51, %v3032_v21  ;;  %4165 = vst [vmem:[#allocation47_spill] sm:$0xff] %v3404_v4  ;;  %v1174_v7 = vadd.f32 %v3387_v39, %v3378_v0  ;;  %v4166_v23 = vsub.f32 %v4128_v8, %v3034_v27  ;;  %v3415_v43 = vpop.eup %2259 }
 0x1c3   : > { %v3397_v6 = vmul.f32 1.442695, %v4163_v49  ;;  %v1427_v18 = vadd.f32 %v3360_v12, %v1426_v11  ;;  %v4167_v9 = vsub.f32 %v4130_v53, %v3034_v27  ;;  %2277 = vpow2.f32 %v1156_v33 }
 0x1c4   : > { %v3402_v25 = vmul.f32 1.442695, %v4164_v60  ;;  %v1632_v28 = vmul.f32 1.442695, %v4166_v23  ;;  %v4168_v51 = vsub.f32 %v4131_v63, %v3034_v27  ;;  %v4169_v11 = vunpack.c.l.bf16 %v2920_v31  ;;  %v3426_v23 = vpop.eup %2261 }
 0x1c5   : > { %v1634_v52 = vmul.f32 1.442695, %v4167_v9  ;;  %v4170_v60 = vunpack.c.l.bf16 %v2925_v56  ;;  %4171 = vst [vmem:[#allocation60_spill] sm:$0xff] %v3426_v23  ;;  %v1428_v53 = vadd.f32 %v3367_v57, %v1427_v18  ;;  %2279 = vpow2.f32 %v1158_v2  ;;  %v4222_v57 = vld [vmem:[#allocation20_spill] sm:$0xff] }
 0x1c6   : > { %v1636_v21 = vmul.f32 1.442695, %v4168_v51  ;;  %v928_v49 = vmul.f32 %v3138_v30, %v4169_v11  ;;  %v1175_v9 = vadd.f32 %v3415_v43, %v1174_v7  ;;  %v4172_v33 = vsub.f32 %v4132_v16, %v3034_v27  ;;  %v3433_v51 = vpop.eup %2263 }
 0x1c7   : > { %v929_v8 = vmul.f32 %v3141_v55, %v4170_v60  ;;  %2281 = vpow2.f32 %v1160_v45  ;;  %v4173_v30 = vsub.f32 %v4133_v37, %v3034_v27  ;;  %v4174_v55 = vsub.f32 %v4135_v26, %v3034_v27  ;;  %v3444_v7 = vpop.eup %2265 }
 0x1c8   : > { %v1638_v63 = vmul.f32 1.442695, %v4172_v33  ;;  %v4175_v2 = vsub.f32 %v4136_v44, %v3034_v27  ;;  %4176 = vst [vmem:[#allocation13_spill] sm:$0xff] %v3444_v7  ;;  %2283 = vrcp.f32 %v927_v54  ;;  %v1429_v16 = vadd.f32 %v3404_v4, %v1428_v53 }
 0x1c9   : > { %v1640_v11 = vmul.f32 1.442695, %v4173_v30  ;;  %v1642_v60 = vmul.f32 1.442695, %v4174_v55  ;;  %v1176_v33 = vadd.f32 %v3433_v51, %v1175_v9  ;;  %v4177_v45 = vsub.f32 %v4137_v32, %v3034_v27  ;;  %v3453_v30 = vpop.eup %2267 }
 0x1ca   : > { %v1644_v18 = vmul.f32 1.442695, %v4175_v2  ;;  %2285 = vpow2.f32 %v1632_v28  ;;  %v4178_v26 = vsub.f32 %v4138_v35, %v3034_v27  ;;  %v4179_v55 = vunpack.c.l.bf16 %v2928_v22  ;;  %v3463_v2 = vpop.eup %2269 }
 0x1cb   : > { %v3451_v37 = vmul.f32 1.442695, %v4177_v45  ;;  %v944_v53 = vadd.f32 %v929_v8, %v928_v49  ;;  %4180 = vst [vmem:[#allocation15_spill] sm:$0xff] %v3463_v2  ;;  %v1430_v9 = vadd.f32 %v3426_v23, %v1429_v16  ;;  %v1177_v32 = vadd.f32 %v3453_v30, %v1176_v33  ;;  %v3472_v35 = vpop.eup %2271  ;;  %v4183_v49 = vld [vmem:[#allocation49_spill] sm:$0xff] }
 0x1cc   : > { %v3458_v44 = vmul.f32 1.442695, %v4178_v26  ;;  %v930_v54 = vmul.f32 %v3157_v10, %v4179_v55  ;;  %2287 = vpow2.f32 %v1634_v52  ;;  %v4181_v28 = vsub.f32 %v4140_v5, %v3034_v27  ;;  %v4185_v55 = vld [vmem:[#allocation31_spill] sm:$0xff]  ;;  %v3482_v33 = vpop.eup %2273 }
 0x1cd   : > { %2289 = vpow2.f32 %v1162_v41  ;;  %v4182_v26 = vsub.f32 %v4141_v48, %v3034_v27  ;;  %v4184_v8 = vunpack.c.l.bf16 %v4183_v49  ;;  %4186 = vst [vmem:[#allocation17_spill] sm:$0xff] %v3482_v33  ;;  %v1431_v52 = vadd.f32 %v3444_v7, %v1430_v9  ;;  %v3491_v48 = vpop.eup %2275 }
 0x1ce   : > { %v3470_v45 = vmul.f32 1.442695, %v4181_v28  ;;  %v945_v36 = vadd.f32 %v944_v53, %v930_v54  ;;  %v1178_v5 = vadd.f32 %v3472_v35, %v1177_v32  ;;  %2291 = vpow2.f32 %v1636_v21  ;;  %v4187_v28 = vld [vmem:[#allocation42_spill] sm:$0xff] }
 0x1cf   : > { %v3477_v10 = vmul.f32 1.442695, %v4182_v26  ;;  %v931_v16 = vmul.f32 %v4185_v55, %v4184_v8  ;;  %v4188_v41 = vsub.f32 %v4187_v28, %v3034_v27  ;;  %2293 = vpow2.f32 %v1164_v61  ;;  %v4190_v54 = vld [vmem:[#allocation50_spill] sm:$0xff]  ;;  %v3508_v61 = vpop.eup %2277 }
 0x1d0   : > { %v4189_v26 = vsub.f32 %v4143_v34, %v3034_v27  ;;  %v4191_v53 = vunpack.c.l.bf16 %v4190_v54  ;;  %v4192_v55 = vld [vmem:[#allocation34_spill] sm:$0xff]  ;;  %v1432_v21 = vadd.f32 %v3463_v2, %v1431_v52  ;;  %v1179_v32 = vadd.f32 %v3491_v48, %v1178_v5  ;;  %v4194_v34 = vld [vmem:[#allocation51_spill] sm:$0xff]  ;;  %v3516_v52 = vpop.eup %2279 }
 0x1d1   : > { %v3489_v23 = vmul.f32 1.442695, %v4188_v41  ;;  %v946_v7 = vadd.f32 %v945_v36, %v931_v16  ;;  %2295 = vpow2.f32 %v1638_v63  ;;  %v4193_v28 = vsub.f32 %v4146_v1, %v3034_v27 }
 0x1d2   : > { %v3496_v8 = vmul.f32 1.442695, %v4189_v26  ;;  %v932_v9 = vmul.f32 %v4192_v55, %v4191_v53  ;;  %2297 = vpow2.f32 %v1166_v24  ;;  %v4195_v26 = vunpack.c.l.bf16 %v4194_v34  ;;  %v3525_v53 = vpop.eup %2281  ;;  %v4203_v55 = vld [vmem:[#allocation57_spill] sm:$0xff] }
 0x1d3   : > { %v3506_v41 = vmul.f32 1.442695, %v4193_v28  ;;  %v4197_v36 = vunpack.c.h.bf16 %v2920_v31  ;;  %v3519_v63 = vadd.f32 %v3482_v33, %v1432_v21  ;;  %v1180_v1 = vadd.f32 %v3508_v61, %v1179_v32  ;;  %v3536_v32 = vpop.eup %2283 }
 0x1d4   : > { %v933_v4 = vmul.f32 %v4196_v38, %v4195_v26  ;;  %v947_v62 = vadd.f32 %v946_v7, %v932_v9  ;;  %2299 = vpow2.f32 %v1640_v11  ;;  %v4199_v5 = vunpack.c.h.bf16 %v2925_v56 }
 0x1d5   : > { %v1189_v16 = vmul.f32 %v3378_v0, %v4197_v36  ;;  %4198 = vst [vmem:[#allocation19_spill] sm:$0xff] %v3519_v63  ;;  %2301 = vpow2.f32 %v3392_v29  ;;  %v4200_v31 = vsub.f32 %v4147_v40, %v3034_v27  ;;  %v4201_v0 = vld [vmem:[#allocation52_spill] sm:$0xff]  ;;  %v1181_v56 = vadd.f32 %v3516_v52, %v1180_v1  ;;  %v4206_v29 = vld [vmem:[#allocation53_spill] sm:$0xff] }
 0x1d6   : > { %v1190_v24 = vmul.f32 %v3387_v39, %v4199_v5  ;;  %v4202_v7 = vunpack.c.l.bf16 %v4201_v0  ;;  %v948_v21 = vadd.f32 %v947_v62, %v933_v4  ;;  %2303 = vpow2.f32 %v1642_v60  ;;  %v4204_v39 = vld [vmem:[#allocation66_spill] sm:$0xff]  ;;  %v4208_v40 = vld [vmem:[#allocation12_spill] sm:$0xff]  ;;  %v3547_v5 = vpop.eup %2285 }
 0x1d7   : > { %v3531_v38 = vmul.f32 1.442695, %v4200_v31  ;;  %v4205_v11 = vsub.f32 %v4204_v39, %v3034_v27  ;;  %v4207_v26 = vunpack.c.l.bf16 %v4206_v29  ;;  %2305 = vpow2.f32 %v3397_v6  ;;  %v4209_v31 = vld [vmem:[#allocation54_spill] sm:$0xff]  ;;  %v4214_v60 = vld [vmem:[#allocation16_spill] sm:$0xff]  ;;  %v3556_v27 = vpop.eup %2287 }
 0x1d8   : > { %v934_v9 = vmul.f32 %v4203_v55, %v4202_v7  ;;  %v4210_v62 = vunpack.c.l.bf16 %v4209_v31  ;;  %v4211_v4 = vld [vmem:[#allocation14_spill] sm:$0xff]  ;;  %v4212_v55 = vld [vmem:[#allocation55_spill] sm:$0xff]  ;;  %v1182_v39 = vadd.f32 %v3525_v53, %v1181_v56  ;;  %2307 = vpow2.f32 %v1644_v18  ;;  %v3562_v6 = vpop.eup %2289 }
 0x1d9   : > { %v3542_v28 = vmul.f32 1.442695, %v4205_v11  ;;  %v935_v36 = vmul.f32 %v4208_v40, %v4207_v26  ;;  %v4213_v1 = vunpack.c.l.bf16 %v4212_v55  ;;  %v4215_v11 = vunpack.c.h.bf16 %v2928_v22  ;;  %v3570_v63 = vpop.eup %2291  ;;  %v4220_v56 = vld [vmem:[#allocation58_spill] sm:$0xff] }
 0x1da   : > { %v936_v7 = vmul.f32 %v4211_v4, %v4210_v62  ;;  %v949_v2 = vadd.f32 %v948_v21, %v934_v9  ;;  %v1205_v40 = vadd.f32 %v1190_v24, %v1189_v16  ;;  %2309 = vpow2.f32 %v3402_v25  ;;  %v4216_v4 = vld [vmem:[#allocation56_spill] sm:$0xff]  ;;  %v4218_v9 = vld [vmem:[#allocation18_spill] sm:$0xff]  ;;  %v3577_v25 = vpop.eup %2293 }
 0x1db   : > { %v937_v33 = vmul.f32 %v4214_v60, %v4213_v1  ;;  %v1191_v26 = vmul.f32 %v3415_v43, %v4215_v11  ;;  %v1664_v62 = vadd.f32 %v3556_v27, %v3547_v5  ;;  %v4217_v1 = vunpack.c.l.bf16 %v4216_v4  ;;  %v3586_v12 = vpop.eup %2295 }
 0x1dc   : > { %v950_v60 = vadd.f32 %v949_v2, %v935_v36  ;;  %v1183_v18 = vadd.f32 %v3562_v6, %v1182_v39  ;;  %2311 = vpow2.f32 %v3451_v37  ;;  %v4219_v22 = vunpack.c.h.bf16 %v4183_v49  ;;  %v4223_v2 = vld [vmem:[#allocation59_spill] sm:$0xff] }
 0x1dd   : > { %v938_v21 = vmul.f32 %v4218_v9, %v4217_v1  ;;  %v1206_v16 = vadd.f32 %v1205_v40, %v1191_v26  ;;  %v1665_v24 = vadd.f32 %v3570_v63, %v1664_v62  ;;  %v4221_v11 = vunpack.c.l.bf16 %v4220_v56  ;;  %v3593_v40 = vpop.eup %2297  ;;  %v4226_v62 = vld [vmem:[#allocation62_spill] sm:$0xff] }
 0x1de   : > { %v1192_v43 = vmul.f32 %v3433_v51, %v4219_v22  ;;  %v4224_v36 = vunpack.c.l.bf16 %v4223_v2  ;;  %v951_v39 = vadd.f32 %v950_v60, %v936_v7  ;;  %v1184_v37 = vadd.f32 %v3577_v25, %v1183_v18  ;;  %v4228_v7 = vld [vmem:[#allocation63_spill] sm:$0xff] }
 0x1df   : > { %v939_v1 = vmul.f32 %v4222_v57, %v4221_v11  ;;  %2313 = vpow2.f32 %v3458_v44  ;;  %v4225_v51 = vunpack.c.h.bf16 %v4190_v54  ;;  %v1666_v57 = vadd.f32 %v3586_v12, %v1665_v24 }
 0x1e0   : > { %v940_v9 = vmul.f32 %v3271_v59, %v4224_v36  ;;  %v1207_v26 = vadd.f32 %v1206_v16, %v1192_v43  ;;  %v4227_v22 = vunpack.c.l.bf16 %v4226_v62  ;;  %v4229_v60 = vunpack.c.l.bf16 %v4228_v7  ;;  %v3602_v36 = vpop.eup %2299 }
 0x1e1   : > { %v1193_v49 = vmul.f32 %v3453_v30, %v4225_v51  ;;  %v952_v18 = vadd.f32 %v951_v39, %v937_v33  ;;  %v1185_v44 = vadd.f32 %v3593_v40, %v1184_v37  ;;  %2315 = vpow2.f32 %v3470_v45  ;;  %v3609_v16 = vpop.eup %2301 }
 0x1e2   : > { %v941_v59 = vmul.f32 %v3286_v20, %v4227_v22  ;;  %v942_v11 = vmul.f32 %v3300_v14, %v4229_v60  ;;  %v4230_v30 = vunpack.c.h.bf16 %v4194_v34  ;;  %v1667_v20 = vadd.f32 %v3602_v36, %v1666_v57  ;;  %v4232_v14 = vld [vmem:[#allocation23_spill] sm:$0xff]  ;;  %v4234_v22 = vld [vmem:[#allocation26_spill] sm:$0xff]  ;;  %v3618_v60 = vpop.eup %2303  ;;  %v4236_v57 = vld [vmem:[#allocation65_spill] sm:$0xff] }
 0x1e3   : > { %v1208_v43 = vadd.f32 %v1207_v26, %v1193_v49  ;;  %v953_v24 = vadd.f32 %v952_v18, %v938_v21  ;;  %v4231_v51 = vunpack.c.l.bf16 %v3078_v47  ;;  %v4233_v39 = vunpack.c.l.bf16 %v3104_v3  ;;  %v3625_v21 = vpop.eup %2305 }
 0x1e4   : > { %v1194_v54 = vmul.f32 %v3472_v35, %v4230_v30  ;;  %v1186_v45 = vadd.f32 %v3609_v16, %v1185_v44  ;;  %2317 = vpow2.f32 %v3477_v10  ;;  %v4235_v35 = vunpack.c.h.bf16 %v4201_v0 }
 0x1e5   : > { %v1434_v33 = vmul.f32 %v4232_v14, %v4231_v51  ;;  %v1435_v37 = vmul.f32 %v4234_v22, %v4233_v39  ;;  %2319 = vpow2.f32 %v3489_v23  ;;  %v1668_v26 = vadd.f32 %v3618_v60, %v1667_v20  ;;  %v3632_v14 = vpop.eup %2307 }
 0x1e6   : > { %v1195_v34 = vmul.f32 %v3491_v48, %v4235_v35  ;;  %v1209_v49 = vadd.f32 %v1208_v43, %v1194_v54  ;;  %v4237_v18 = vunpack.c.l.bf16 %v4236_v57  ;;  %v954_v51 = vadd.f32 %v953_v24, %v939_v1  ;;  %v3639_v54 = vpop.eup %2309 }
 0x1e7   : > { %v1187_v10 = vadd.f32 %v3625_v21, %v1186_v45  ;;  %2321 = vpow2.f32 %v3496_v8  ;;  %v4238_v48 = vunpack.c.h.bf16 %v4206_v29  ;;  %v1669_v23 = vadd.f32 %v3632_v14, %v1668_v26  ;;  %v3645_v39 = vpop.eup %2311 }
 0x1e8   : > { %v943_v30 = vmul.f32 %v3320_v17, %v4237_v18  ;;  %v1210_v44 = vadd.f32 %v1209_v49, %v1195_v34  ;;  %v955_v43 = vadd.f32 %v954_v51, %v940_v9  ;;  %v4239_v20 = vunpack.c.l.bf16 %v3107_v58  ;;  %v4240_v17 = vld [vmem:[#allocation29_spill] sm:$0xff]  ;;  %v4243_v34 = vld [vmem:[#allocation32_spill] sm:$0xff] }
 0x1e9   : > { %v1196_v0 = vmul.f32 %v3508_v61, %v4238_v48  ;;  %v1450_v24 = vadd.f32 %v1435_v37, %v1434_v33  ;;  %v1188_v22 = vadd.f32 %v3639_v54, %v1187_v10  ;;  %2323 = vpow2.f32 %v3506_v41  ;;  %v3656_v33 = vpop.eup %2313  ;;  %v4246_v10 = vld [vmem:[#allocation22_spill] sm:$0xff] }
 0x1ea   : > { %v1436_v1 = vmul.f32 %v4240_v17, %v4239_v20  ;;  %v4241_v8 = vunpack.c.h.bf16 %v4209_v31  ;;  %v1670_v45 = vadd.f32 %v3645_v39, %v1669_v23  ;;  %v956_v35 = vadd.f32 %v955_v43, %v941_v59  ;;  %v4248_v43 = vld [vmem:[#allocation25_spill] sm:$0xff] }
 0x1eb   : > { %v1211_v29 = vadd.f32 %v1210_v44, %v1196_v0  ;;  %v4242_v9 = vunpack.c.l.bf16 %v3110_v19  ;;  %2325 = vpow2.f32 %v3531_v38  ;;  %v4244_v37 = vunpack.c.h.bf16 %v4212_v55  ;;  %v3669_v23 = vpop.eup %2315 }
 0x1ec   : > { %v1197_v61 = vmul.f32 %v3516_v52, %v4241_v8  ;;  %v1451_v26 = vadd.f32 %v1450_v24, %v1436_v1  ;;  %v4245_v31 = vunpack.c.h.bf16 %v4216_v4  ;;  %v1671_v59 = vadd.f32 %v3656_v33, %v1670_v45 }
 0x1ed   : > { %v1437_v49 = vmul.f32 %v4243_v34, %v4242_v9  ;;  %v1198_v41 = vmul.f32 %v3525_v53, %v4244_v37  ;;  %v957_v51 = vadd.f32 %v956_v35, %v942_v11  ;;  %v4247_v48 = vunpack.c.l.bf16 %v4246_v10  ;;  %v3703_v9 = vld [vmem:[%s3854_s2 + $0x8] sm:$0xff] }
 0x1ee   : > { %v1199_v52 = vmul.f32 %v3562_v6, %v4245_v31  ;;  %v1212_v18 = vadd.f32 %v1211_v29, %v1197_v61  ;;  %v4249_v55 = vunpack.c.l.bf16 %v4248_v43  ;;  %v4250_v4 = vunpack.c.h.bf16 %v3078_v47  ;;  %v3681_v24 = vpop.eup %2317 }
 0x1ef   : > { %v1438_v0 = vmul.f32 %v3312_v50, %v4247_v48  ;;  %v1452_v44 = vadd.f32 %v1451_v26, %v1437_v49  ;;  %v4251_v20 = vunpack.c.h.bf16 %v3104_v3  ;;  %2327 = vrcp.f32 %v1188_v22  ;;  %v3688_v61 = vpop.eup %2319  ;;  %v4253_v22 = vld [vmem:[#allocation28_spill] sm:$0xff]  ;;  %v4257_v26 = vld [vmem:[#allocation37_spill] sm:$0xff]  ;;  %v4261_v48 = vld [vmem:[#allocation43_spill] sm:$0xff] }
 0x1f0   : > { %v1213_v38 = vadd.f32 %v1212_v18, %v1198_v41  ;;  %v1439_v53 = vmul.f32 %v3327_v46, %v4249_v55  ;;  %v1679_v6 = vmul.f32 %v3547_v5, %v4250_v4  ;;  %v1672_v17 = vadd.f32 %v3669_v23, %v1671_v59  ;;  %v4264_v4 = vld [vmem:[#allocation46_spill] sm:$0xff] }
 0x1f1   : > { %v1680_v11 = vmul.f32 %v3556_v27, %v4251_v20  ;;  %v958_v50 = vadd.f32 %v957_v51, %v943_v30  ;;  %v1453_v1 = vadd.f32 %v1452_v44, %v1438_v0  ;;  %2329 = vpow2.f32 %v3542_v28  ;;  %v3695_v35 = vpop.eup %2321  ;;  %v4266_v20 = vld [vmem:[#allocation41_spill] sm:$0xff] }
 0x1f2   : > { %v4252_v8 = vunpack.c.h.bf16 %v4220_v56  ;;  %v1214_v47 = vadd.f32 %v1213_v38, %v1199_v52  ;;  %v1589_v5 = vunpack.c.h.bf16 %v4246_v10  ;;  %v1673_v3 = vadd.f32 %v3681_v24, %v1672_v17 }
 0x1f3   : > { %v960_v27 = vmul.f32 %v3536_v32, %v958_v50  ;;  %v4254_v30 = vunpack.c.l.bf16 %v4253_v22  ;;  %v1454_v45 = vadd.f32 %v1453_v1, %v1439_v53  ;;  %v4255_v28 = vunpack.c.h.bf16 %v4223_v2  ;;  %v3713_v31 = vpop.eup %2323  ;;  %v1996_v1 = vld [vmem:[%s2673_s29 + $0xd8] sm:$0xff]  }
 0x1f4   : > { %v1200_v46 = vmul.f32 %v3577_v25, %v4252_v8  ;;  %v4256_v34 = vunpack.c.h.bf16 %v3107_v58  ;;  %v1695_v49 = vadd.f32 %v1680_v11, %v1679_v6  ;;  %v4258_v37 = vunpack.c.l.bf16 %v4257_v26 }
 0x1f5   : > { %v1440_v29 = vmul.f32 %v3339_v42, %v4254_v30  ;;  %v1201_v25 = vmul.f32 %v3593_v40, %v4255_v28  ;;  %v1674_v42 = vadd.f32 %v3688_v61, %v1673_v3  ;;  %2042 = vmatprep.subr.mxu0 %v960_v27  ;;  %v1590_v40 = vunpack.c.h.bf16 %v4248_v43  ;;  %v4268_v3 = vld [vmem:[#allocation64_spill] sm:$0xff] }
 0x1f6   : > { %v1215_v56 = vadd.f32 %v1214_v47, %v1200_v46  ;;  %v1681_v32 = vmul.f32 %v3570_v63, %v4256_v34  ;;  %v1441_v2 = vmul.f32 %v3346_v15, %v4258_v37  ;;  %2043 = vmatpush3.msra.mxu0 %v960_v27  ;;  %v4259_v52 = vunpack.c.h.bf16 %v4226_v62 }
 0x1f7   : > { %v1455_v41 = vadd.f32 %v1454_v45, %v1440_v29  ;;  %v4260_v63 = vunpack.c.h.bf16 %v3110_v19  ;;  %v1675_v10 = vadd.f32 %v3695_v35, %v1674_v42  ;;  %v4262_v15 = vunpack.c.l.bf16 %v4261_v48  ;;  %2045 = vmatmul.mubr.msk.f32.vlgmr.msra.gmra.mrb[32].mxu0 %vm971_vm0, %v3703_v9 }
 0x1f8   : > { %v1202_v58 = vmul.f32 %v3609_v16, %v4259_v52  ;;  %v1216_v18 = vadd.f32 %v1215_v56, %v1201_v25  ;;  %v1696_v51 = vadd.f32 %v1695_v49, %v1681_v32  ;;  %v1591_v62 = vunpack.c.h.bf16 %v4253_v22  ;;  %v3728_v16 = vpop.eup %2325  ;;  %v4270_v22 = vld [vmem:[#allocation44_spill] sm:$0xff]  ;;  %v1997_v25 = vld [vmem:[%s2673_s29 + $0xe8] sm:$0xff]   ;;  %v4272_v49 = vld [vmem:[#allocation35_spill] sm:$0xff] }
 0x1f9   : > { %v1682_v59 = vmul.f32 %v3586_v12, %v4260_v63  ;;  %v1442_v0 = vmul.f32 %v3353_v13, %v4262_v15  ;;  %v1456_v44 = vadd.f32 %v1455_v41, %v1441_v2  ;;  %v4263_v19 = vunpack.c.h.bf16 %v4228_v7  ;;  %v2335_v13 = vld [vmem:[%s3854_s2] sm:$0xff]  ;;  %v2328_v47 = vpop.eup %2327 }
 0x1fa   : > { %v1217_v38 = vadd.f32 %v1216_v18, %v1202_v58  ;;  %v1683_v43 = vmul.f32 %v3602_v36, %v1589_v5  ;;  %2054 = vmatprep.mubr.msk.f32.mxu0 %vm971_vm0, %v2335_v13  ;;  %v1676_v53 = vadd.f32 %v3713_v31, %v1675_v10  ;;  %v4265_v6 = vunpack.c.l.bf16 %v4264_v4  ;;  %v4277_v10 = vld [vmem:[#allocation60_spill] sm:$0xff] }
 0x1fb   : > { %v1203_v12 = vmul.f32 %v3625_v21, %v4263_v19  ;;  %v1697_v55 = vadd.f32 %v1696_v51, %v1682_v59  ;;  %v1457_v7 = vadd.f32 %v1456_v44, %v1442_v0  ;;  %v1592_v21 = vunpack.c.h.bf16 %v4257_v26  ;;  %v2330_v28 = vpop.eup %2329  ;;  %v4274_v26 = vld [vmem:[#allocation47_spill] sm:$0xff]  ;;  %v4275_v59 = vld [vmem:[#allocation38_spill] sm:$0xff]  ;;  %v4278_v19 = vld [vmem:[#allocation13_spill] sm:$0xff] }
 0x1fc   : > { %v1443_v11 = vmul.f32 %v4266_v20, %v4265_v6  ;;  %v4267_v17 = vunpack.c.h.bf16 %v4236_v57  ;;  %v1684_v8 = vmul.f32 %v3618_v60, %v1590_v40  ;;  %v1677_v5 = vadd.f32 %v3728_v16, %v1676_v53  ;;  %v4271_v57 = vld [vmem:[#allocation19_spill] sm:$0xff] }
 0x1fd   : > { %v1218_v50 = vadd.f32 %v1217_v38, %v1203_v12  ;;  %v1698_v46 = vadd.f32 %v1697_v55, %v1683_v43  ;;  %v4269_v27 = vunpack.c.l.bf16 %v4268_v3  ;;  %v1593_v45 = vunpack.c.h.bf16 %v4261_v48  ;;  %v1998_v40 = vld [vmem:[%s2673_s29 + $0xf8] sm:$0xff]  }
 0x1fe   : > { %v1204_v36 = vmul.f32 %v3639_v54, %v4267_v17  ;;  %v1458_v29 = vadd.f32 %v1457_v7, %v1443_v11  ;;  %2331 = vrcp.f32 %v4271_v57  ;;  %v1685_v56 = vmul.f32 %v3632_v14, %v1591_v62  ;;  %v4279_v53 = vld [vmem:[#allocation15_spill] sm:$0xff]  ;;  %v4280_v7 = vld [vmem:[#allocation17_spill] sm:$0xff] }
 0x1ff   : > { %v1444_v30 = vmul.f32 %v4270_v22, %v4269_v27  ;;  %v1699_v60 = vadd.f32 %v1698_v46, %v1684_v8  ;;  %v1678_v34 = vadd.f32 %v2330_v28, %v1677_v5  ;;  %v1353_v32 = vunpack.c.l.bf16 %v1996_v1 }
 0x200   : > { %v1219_v54 = vadd.f32 %v1218_v50, %v1204_v36  ;;  %v4273_v42 = vunpack.c.l.bf16 %v4272_v49  ;;  %v1594_v52 = vunpack.c.h.bf16 %v4264_v4  ;;  %v1686_v58 = vmul.f32 %v3645_v39, %v1592_v21 }
 0x201   : > { %v1459_v2 = vadd.f32 %v1458_v29, %v1444_v30  ;;  %v1700_v18 = vadd.f32 %v1699_v60, %v1685_v56  ;;  %v1354_v63 = vunpack.c.l.bf16 %v1997_v25  ;;  %v4276_v51 = vunpack.c.l.bf16 %v4275_v59 }
 0x202   : > { %v1445_v37 = vmul.f32 %v4274_v26, %v4273_v42  ;;  %v1221_v41 = vmul.f32 %v2328_v47, %v1219_v54  ;;  %v1595_v15 = vunpack.c.h.bf16 %v4268_v3  ;;  %v1687_v0 = vmul.f32 %v3656_v33, %v1593_v45 }
 0x203   : > { %v1446_v14 = vmul.f32 %v4277_v10, %v4276_v51  ;;  %v1701_v44 = vadd.f32 %v1700_v18, %v1686_v58  ;;  %v1355_v62 = vunpack.c.l.bf16 %v1998_v40  ;;  %v1447_v12 = vmul.f32 %v4278_v19, %v1353_v32 }
 0x204   : > { %v1460_v48 = vadd.f32 %v1459_v2, %v1445_v37  ;;  %2047 = vmatprep.subr.mxu1 %v1221_v41  ;;  %v1596_v39 = vunpack.c.h.bf16 %v4272_v49  ;;  %v1688_v43 = vmul.f32 %v3669_v23, %v1594_v52  ;;  %v1448_v4 = vmul.f32 %v4279_v53, %v1354_v63 }
 0x205   : > { %2048 = vmatpush3.msra.mxu1 %v1221_v41  ;;  %v1702_v55 = vadd.f32 %v1701_v44, %v1687_v0  ;;  %v1597_v33 = vunpack.c.h.bf16 %v4275_v59  ;;  %v1689_v20 = vmul.f32 %v3681_v24, %v1595_v15  ;;  %2333 = vrcp.f32 %v1678_v34 }
 0x206   : > { %v1461_v38 = vadd.f32 %v1460_v48, %v1446_v14  ;;  %2050 = vmatmul.mubr.msk.f32.vlgmr.msra.gmra.mrb[32].mxu1 %vm971_vm0, %v3703_v9  ;;  %v1449_v21 = vmul.f32 %v4280_v7, %v1355_v62  ;;  %v1598_v23 = vunpack.c.h.bf16 %v1996_v1  ;;  %v1690_v50 = vmul.f32 %v3688_v61, %v1596_v39 }
 0x207   : > { %2059 = vmatprep.mubr.msk.f32.mxu1 %vm971_vm0, %v2335_v13  ;;  %v1703_v11 = vadd.f32 %v1702_v55, %v1688_v43  ;;  %v1599_v47 = vunpack.c.h.bf16 %v1997_v25  ;;  %v1691_v5 = vmul.f32 %v3695_v35, %v1597_v33  ;;  %v1600_v27 = vunpack.c.h.bf16 %v1998_v40 }
 0x208   : > { %v1462_v6 = vadd.f32 %v1461_v38, %v1447_v12  ;;  %v2332_v36 = vpop.eup %2331  ;;  %v1692_v22 = vmul.f32 %v3713_v31, %v1598_v23  ;;  %v964_v31 = vpop.permute.xlu0 %963 }
 0x209   : > { %v1704_v8 = vadd.f32 %v1703_v11, %v1689_v20  ;;  %v1693_v30 = vmul.f32 %v3728_v16, %v1599_v47  ;;  %v1694_v61 = vmul.f32 %v2330_v28, %v1600_v27 }
 0x20a   : > { %v1463_v17 = vadd.f32 %v1462_v6, %v1448_v4 }
 0x20b   : > { %v1705_v3 = vadd.f32 %v1704_v8, %v1690_v50 }
 0x20c   : > { %v1464_v46 = vadd.f32 %v1463_v17, %v1449_v21  ;;  %v969_v54 = vpop.permute.xlu0 %968 }
 0x20d   : > { %v1706_v24 = vadd.f32 %v1705_v3, %v1691_v5 }
 0x20e   : > { %v1466_v13 = vmul.f32 %v2332_v36, %v1464_v46 }
 0x20f   : > { %v1707_v29 = vadd.f32 %v1706_v24, %v1692_v22  ;;  %v2334_v45 = vpop.eup %2333 }
 0x210   : > { %2052 = vmatprep.subr.mxu0 %v1466_v13 }
 0x211   : > { %2053 = vmatpush3.msra.mxu0 %v1466_v13  ;;  %v1708_v1 = vadd.f32 %v1707_v29, %v1693_v30 }
 0x212   : > { %2055 = vmatmul.mubr.msk.f32.vlgmr.msra.gmra.mrb[34].mxu0 %vm971_vm0, %v3703_v9 }
 0x213   : > { %v1709_v57 = vadd.f32 %v1708_v1, %v1694_v61 }
 0x215   : > { %v1711_v35 = vmul.f32 %v2334_v45, %v1709_v57 }
 0x217   : > { %2057 = vmatprep.subr.mxu1 %v1711_v35 }
 0x218   : > { %2058 = vmatpush3.msra.mxu1 %v1711_v35 }
 0x219   : > { %2060 = vmatmul.mubr.msk.f32.vlgmr.msra.gmra.mrb[34].mxu1 %vm971_vm0, %v3703_v9 }
 0x2ca   : > { %v2046_v25 = vpop.f32.mrb[32].mxu0 }
 0x2cb   : > { %v1044_v56 = vpop.f32.mrb[33].mxu0  ;;  %v1050_v16 = vadd.f32 %v2046_v25, %v969_v54 }
 0x2cc   : > { %v1045_v60 = vadd.f32 %v1044_v56, %v964_v31 }
 0x2cd   : > { %vm1054_vm1 = vcmp.gt.f32.partialorder %v1050_v16, 0.0  ;;  %v1056_v34 = vmul.f32 0.2, %v1050_v16 }
 0x2ce   : > { %vm1053_vm2 = vcmp.gt.f32.partialorder %v1045_v60, 0.0  ;;  %v1055_v28 = vmul.f32 0.2, %v1045_v60 }
 0x2cf   : > { %v1058_v32 = vsel %vm1054_vm1, %v1050_v16, %v1056_v34 }
 0x2d0   : > { %v1057_v49 = vsel %vm1053_vm2, %v1045_v60, %v1055_v28  ;;  %1060 = vst [vmem:[%s3786_s9 + $0x20] sm:$0xff] %v1058_v32 }
 0x2d1   : > { %1059 = vst [vmem:[%s3786_s9] sm:$0xff] %v1057_v49 }
 0x2d9   : > { %v2051_v9 = vpop.f32.mrb[32].mxu1 }
 0x2da   : > { %v1288_v42 = vpop.f32.mrb[33].mxu1  ;;  %v1294_v26 = vadd.f32 %v2051_v9, %v969_v54 }
 0x2db   : > { %v1289_v37 = vadd.f32 %v1288_v42, %v964_v31 }
 0x2dc   : > { %vm1298_vm3 = vcmp.gt.f32.partialorder %v1294_v26, 0.0  ;;  %v1300_v2 = vmul.f32 0.2, %v1294_v26 }
 0x2dd   : > { %vm1297_vm4 = vcmp.gt.f32.partialorder %v1289_v37, 0.0  ;;  %v1299_v41 = vmul.f32 0.2, %v1289_v37 }
 0x2de   : > { %v1302_v40 = vsel %vm1298_vm3, %v1294_v26, %v1300_v2 }
 0x2df   : > { %v1301_v52 = vsel %vm1297_vm4, %v1289_v37, %v1299_v41  ;;  %1982 = vst [vmem:[%s3786_s9 + $0x28] sm:$0xff] %v1302_v40 }
 0x2e0   : > { %1981 = vst [vmem:[%s3786_s9 + $0x8] sm:$0xff] %v1301_v52 }
 0x2e5   : > { %v2056_v58 = vpop.f32.mrb[34].mxu0 }
 0x2e6   : > { %v1539_v18 = vadd.f32 %v2056_v58, %v969_v54  ;;  %v1533_v63 = vpop.f32.mrb[35].mxu0 }
 0x2e7   : > { %v1534_v59 = vadd.f32 %v1533_v63, %v964_v31 }
 0x2e8   : > { %vm1543_vm5 = vcmp.gt.f32.partialorder %v1539_v18, 0.0  ;;  %v1545_v51 = vmul.f32 0.2, %v1539_v18 }
 0x2e9   : > { %vm1542_vm6 = vcmp.gt.f32.partialorder %v1534_v59, 0.0  ;;  %v1544_v10 = vmul.f32 0.2, %v1534_v59 }
 0x2ea   : > { %v1547_v14 = vsel %vm1543_vm5, %v1539_v18, %v1545_v51 }
 0x2eb   : > { %2002 = vst [vmem:[%s3786_s9 + $0x30] sm:$0xff] %v1547_v14  ;;  %v1546_v48 = vsel %vm1542_vm6, %v1534_v59, %v1544_v10 }
 0x2ec   : > { %2001 = vst [vmem:[%s3786_s9 + $0x10] sm:$0xff] %v1546_v48  ;;  %v2061_v15 = vpop.f32.mrb[34].mxu1 }
 0x2ed   : > { %v1784_v0 = vadd.f32 %v2061_v15, %v969_v54  ;;  %v1778_v44 = vpop.f32.mrb[35].mxu1 }
 0x2ee   : > { %v1779_v62 = vadd.f32 %v1778_v44, %v964_v31 }
 0x2ef   : > { %vm1788_vm7 = vcmp.gt.f32.partialorder %v1784_v0, 0.0  ;;  %v1790_v19 = vmul.f32 0.2, %v1784_v0 }
 0x2f0   : > { %vm1787_vm8 = vcmp.gt.f32.partialorder %v1779_v62, 0.0  ;;  %v1789_v12 = vmul.f32 0.2, %v1779_v62 }
 0x2f1   : > { %v1792_v38 = vsel %vm1788_vm7, %v1784_v0, %v1790_v19 }
 0x2f2   : > { %2022 = vst [vmem:[%s3786_s9 + $0x38] sm:$0xff] %v1792_v38  ;;  %v1791_v39 = vsel %vm1787_vm8, %v1779_v62, %v1789_v12 }
 0x2f3   : > { %2021 = vst [vmem:[%s3786_s9 + $0x18] sm:$0xff] %v1791_v39 }
 0x2f4   : > { %2407 = shalt.err (!%p2404_p5)
}
 0x2f5   : > { %s2408_s28 = scalar_lea.hbm %s3801_s25, 1024  ;;  %s2412_s30 = scalar_lea.hbm %s3856_s4, 2048 }
 0x2f6   : > { %p2409_p9 = scmp.ne.s32.totalorder %s3801_s25, %s2408_s28  ;;  %p2413_p3 = scmp.lt.u32.totalorder %s3801_s25, %s3856_s4 }
 0x2f7   : > { %p2414_p7 = scmp.lt.u32.totalorder %s2412_s30, %s2408_s28  ;;  %p2416_p4 = scmp.lt.u32.totalorder %s2408_s28, %s3801_s25 }
 0x2f8   : > { %p2410_p1 = pnand %p2409_p9, %p2613_p10 }
 0x2f9   : > { %p2415_p13 = por %p2414_p7, %p2413_p3 }
 0x2fa   : > { %p2411_p2 = pneg %p2410_p1 }
 0x2fb   : > { %p2417_p6 = por %p2416_p4, %p2415_p13 }
 0x2fd   : > { %p2418_p8 = pnand %p2417_p6, %p2411_p2 }
 0x2ff   : > { %2421 = shalt.err (!%p2418_p8)
}
 0x300   : > { %s2490_s12 = smov 512   ;;  %s2491_s29 = smov 32  }
 0x301   : > { %2068 = dma.vmem_to_hbm [thread:$0]  (%p2613_p10), %s3796_s11, 1024, %s3801_s25, %s1797_s18, %s2490_s12, %s2490_s12, %s2491_s29  }
 0x302 PF: > { %s1827_s23 = sand.u32 1, %s2460_s15   ;;  %p4281_p12 = scmp.ne.s32.totalorder %s4007_s26, 0 }
 0x303   : > { %p4282_p11 = scmp.ge.s32.totalorder %s2480_s20, 2  ;;  %s1828_s27 = scalar_lea.sflag [#allocation5], %s1827_s23 }
 0x305   : > { %p2079_p0 = pnand %p4282_p11, %p4281_p12 }
 0x307   : > { %2455 = dma.done.wait (!%p2079_p0), %s1828_s27, 1024  }
 0x308   : > { %2457 = vsyncadd (!%p2079_p0), %s1828_s27, 4294966272  ;;  %s21_s20 = sadd.s32 1, %s2480_s20   ;;  %s4283_s15 = smov %s2464_s16 }
 0x309   : > { %p18_p5 = scmp.ge.s32.totalorder %s21_s20, 4   ;;  %s4284_s16 = smov %s2468_s17 }
 0x30a   : > { %s4285_s17 = smov %s2622_s10  ;;  %s4286_s18 = smov %s2476_s19 }
 0x30b   : > { %s4287_s19 = smov %s4289_s5  ;;  %20 = sbr.rel (!%p18_p5) target bundleno = 7 (0x7), region = 94 }
 0x312   :  { %1833 = vsyncpa [#allocation4], 1 }
 0x313   :  { %1835 = vsyncpa [#allocation4 + $0x1], 1 }
 0x314   :  { %1836 = vsyncpa [#allocation7], 1 }
 0x315   :  { %1837 = vsyncpa [#allocation5], 1 }
 0x316   :  { %1839 = vsyncpa [#allocation5 + $0x1], 1 }

</bundles_post_ra>
